<compile_context>
chip_gen: v6e
topology: v6e:2x2x1
jax: 0.10.0
libtpu: 0.0.40
codegen_flags: <defaults>
</compile_context>

<pallas_src>
import functools

import jax
import jax.numpy as jnp
from jax.experimental import pallas as pl
from jax.experimental.pallas import tpu as pltpu


def _round_up(x, m):
    return ((x + m - 1) // m) * m


# ----------------------------- fused per-layer kernel -----------------------------

def _gin_layer_kernel(*refs, n_max, dp_in, dp_out, last):
    """Fused GIN layer: aggregation + (1+eps)*X + 2-layer MLP (+ masked slot-sum)."""
    if last:
        (eps_ref, a_ref, xs_ref, xt_ref, w1_ref, b1_ref, w2_ref, b2_ref,
         mask_ref, o_ref, acc_ref) = refs
    else:
        (eps_ref, a_ref, xs_ref, xt_ref, w1_ref, b1_ref, w2_ref, b2_ref,
         o_ref, acc_ref) = refs
        mask_ref = None

    k = pl.program_id(1)

    @pl.when(k == 0)
    def _():
        acc_ref[...] = jnp.zeros_like(acc_ref)

    # Neighbor sum aggregation: acc += A_tile @ X_src_tile   (bf16 in, f32 accumulate).
    acc_ref[...] += jnp.dot(a_ref[...], xs_ref[...],
                            preferred_element_type=jnp.float32)

    @pl.when(k == pl.num_programs(1) - 1)
    def _():
        one_plus_eps = 1.0 + eps_ref[0, 0]
        w1 = w1_ref[...]          # [dp_in, hp]   bf16
        b1 = b1_ref[...]          # [1, hp]       f32
        w2 = w2_ref[...]          # [hp, dp_out]  bf16
        b2 = b2_ref[...]          # [1, dp_out]   f32

        if last:
            mask = mask_ref[...]                                   # [TM, n_max] f32
            pe = jnp.zeros((o_ref.shape[0], dp_out), jnp.float32)

        # Static unroll over padded "slot" axis (n_max is a trace-time constant).
        for j in range(n_max):
            lo = j * dp_in
            zj = acc_ref[:, lo:lo + dp_in] + \
                one_plus_eps * xt_ref[:, lo:lo + dp_in].astype(jnp.float32)
            h = jnp.dot(zj.astype(jnp.bfloat16), w1,
                        preferred_element_type=jnp.float32) + b1
            h = jnp.maximum(h, 0.0).astype(jnp.bfloat16)
            y = jnp.dot(h, w2, preferred_element_type=jnp.float32) + b2
            if last:
                pe = pe + mask[:, j:j + 1] * y                     # fused masked sum
            else:
                o_ref[:, j * dp_out:(j + 1) * dp_out] = y.astype(o_ref.dtype)

        if last:
            o_ref[...] = pe.astype(o_ref.dtype)


def _fused_gin_layer(x_flat, adj, mask_p, p, *, n_max, last, tm, tk):
    """x_flat: [N_pad, n_max*dp_in] bf16, adj: [N_pad, N_pad] bf16, mask_p: [N_pad, n_max] f32."""
    n_pad, f_in = x_flat.shape
    d_in, hidden = p["w1"].shape
    d_out = p["w2"].shape[1]
    dp_in = _round_up(d_in, 128)
    hp = _round_up(hidden, 128)
    dp_out = _round_up(d_out, 128)
    f_out = n_max * dp_out
    assert f_in == n_max * dp_in, (f_in, n_max, dp_in)

    # Pad weights to lane-dense 128-multiples (zeros -> math unchanged), cast to bf16.
    w1 = jnp.zeros((dp_in, hp), jnp.float32).at[:d_in, :hidden].set(p["w1"]).astype(jnp.bfloat16)
    b1 = jnp.zeros((1, hp), jnp.float32).at[:, :hidden].set(p["b1"])
    w2 = jnp.zeros((hp, dp_out), jnp.float32).at[:hidden, :d_out].set(p["w2"]).astype(jnp.bfloat16)
    b2 = jnp.zeros((1, dp_out), jnp.float32).at[:, :d_out].set(p["b2"])
    eps = p["eps"].reshape(1, 1).astype(jnp.float32)

    grid = (n_pad // tm, n_pad // tk)

    in_specs = [
        pl.BlockSpec((1, 1), lambda i, k: (0, 0), memory_space=pltpu.MemorySpace.SMEM),  # eps
        pl.BlockSpec((tm, tk), lambda i, k: (i, k)),        # A tile
        pl.BlockSpec((tk, f_in), lambda i, k: (k, 0)),      # X (source rows, reduction)
        pl.BlockSpec((tm, f_in), lambda i, k: (i, 0)),      # X (self rows)
        pl.BlockSpec((dp_in, hp), lambda i, k: (0, 0)),     # w1 (resident)
        pl.BlockSpec((1, hp), lambda i, k: (0, 0)),         # b1
        pl.BlockSpec((hp, dp_out), lambda i, k: (0, 0)),    # w2
        pl.BlockSpec((1, dp_out), lambda i, k: (0, 0)),     # b2
    ]
    args = [eps, adj, x_flat, x_flat, w1, b1, w2, b2]
    if last:
        in_specs.append(pl.BlockSpec((tm, n_max), lambda i, k: (i, 0)))  # mask
        args.append(mask_p)
        out_spec = pl.BlockSpec((tm, dp_out), lambda i, k: (i, 0))
        out_shape = jax.ShapeDtypeStruct((n_pad, dp_out), jnp.float32)
        out_elems, out_bytes_per = n_pad * dp_out, 4
    else:
        out_spec = pl.BlockSpec((tm, f_out), lambda i, k: (i, 0))
        out_shape = jax.ShapeDtypeStruct((n_pad, f_out), jnp.bfloat16)
        out_elems, out_bytes_per = n_pad * f_out, 2

    flops = 2 * n_pad * n_pad * f_in + 2 * n_pad * n_max * (dp_in * hp + hp * dp_out)
    bytes_accessed = (adj.size * 2 + 2 * x_flat.size * 2
                      + (w1.size + w2.size) * 2 + (b1.size + b2.size) * 4
                      + out_elems * out_bytes_per)

    # VMEM budget from the chosen tiles (double-buffered inputs + acc scratch), with headroom.
    vmem_est = (2 * tm * tk * 2 + 2 * tk * f_in * 2 + 2 * tm * f_in * 2
                + 2 * tm * (dp_out if last else f_out) * out_bytes_per
                + tm * f_in * 4
                + (w1.size + w2.size) * 2 + (b1.size + b2.size) * 4)
    vmem_limit = int(min(max(2 * vmem_est + (8 << 20), 32 << 20), 96 << 20))

    kernel = functools.partial(_gin_layer_kernel, n_max=n_max, dp_in=dp_in,
                               dp_out=dp_out, last=last)
    return pl.pallas_call(
        kernel,
        out_shape=out_shape,
        grid=grid,
        in_specs=in_specs,
        out_specs=out_spec,
        scratch_shapes=[pltpu.VMEM((tm, f_in), jnp.float32)],
        compiler_params=pltpu.CompilerParams(
            dimension_semantics=("parallel", "arbitrary"),
            vmem_limit_bytes=vmem_limit),
        cost_estimate=pl.CostEstimate(flops=flops, transcendentals=0,
                                      bytes_accessed=bytes_accessed),
    )(*args)


# ------------------------------ parameters & model ------------------------------

def init_gin_params(key, n_layers, in_dim, hidden_dim, out_dim):
    params = []
    d_in = in_dim
    for layer in range(n_layers):
        d_out = hidden_dim if layer < n_layers - 1 else out_dim
        key, k1, k2, k3 = jax.random.split(key, 4)
        params.append(dict(
            w1=jax.random.normal(k1, (d_in, hidden_dim), jnp.float32) / jnp.sqrt(d_in),
            b1=jnp.zeros((hidden_dim,), jnp.float32),
            w2=jax.random.normal(k2, (hidden_dim, d_out), jnp.float32) / jnp.sqrt(hidden_dim),
            b2=jnp.zeros((d_out,), jnp.float32),
            eps=0.1 * jax.random.normal(k3, (1,), jnp.float32),
        ))
        d_in = d_out
    return params


def _pad_and_mask(W_list):
    """Mirror the PyTorch padding / mask construction exactly."""
    n_max = max(int(W.shape[0]) for W in W_list)
    pads, masks = [], []
    for W in W_list:
        n, m, d = W.shape
        zeros = jnp.zeros((n, n_max - m, d), W.dtype)
        pads.append(jnp.concatenate([W, zeros], axis=1))
        masks.append(jnp.tile((jnp.arange(n_max) < n)[None, :], (n, 1)))
    X = jnp.concatenate(pads, axis=0).astype(jnp.float32)      # [N, n_max, in_dim]
    mask = jnp.concatenate(masks, axis=0).astype(jnp.float32)  # [N, n_max]
    return X, mask


def gin_phi_forward(W_list, edge_index, params):
    X, mask = _pad_and_mask(W_list)
    N, n_max, in_dim = X.shape
    out_dim = params[-1]["w2"].shape[1]

    # Tile / padding policy, chosen once outside the layer loop.
    TILE = 256
    if N <= TILE:
        n_pad = _round_up(N, 8)
        tm = tk = n_pad
    else:
        n_pad = _round_up(N, TILE)
        tm = tk = TILE

    dp_in = _round_up(in_dim, 128)
    x = jnp.pad(X, ((0, n_pad - N), (0, 0), (0, dp_in - in_dim)))
    x_flat = x.reshape(n_pad, n_max * dp_in).astype(jnp.bfloat16)   # lane-dense activations
    mask_p = jnp.pad(mask, ((0, n_pad - N), (0, 0)))

    # Dense adjacency for sum aggregation: A[t, s] = #edges s->t (exact in bf16).
    src, dst = edge_index[0], edge_index[1]
    adj = jnp.zeros((n_pad, n_pad), jnp.float32).at[dst, src].add(1.0).astype(jnp.bfloat16)

    n_layers = len(params)
    out = None
    for li, p in enumerate(params):
        last = li == n_layers - 1
        out = _fused_gin_layer(x_flat, adj, mask_p, p,
                               n_max=n_max, last=last, tm=tm, tk=tk)
        if not last:
            x_flat = out   # already padded / flattened / bf16 for the next layer

    # Last layer already applied  PE = (PE * mask[..., None]).sum(dim=1)  in-kernel.
    return out[:N, :out_dim]


# ---------------------------------- reference ------------------------------------
# Pure-JAX reference with the SAME precision policy as the kernel
# (bf16 MXU inputs, f32 accumulation) so the comparison isolates kernel correctness.

def gin_phi_reference(W_list, edge_index, params):
    X, mask = _pad_and_mask(W_list)
    N, n_max, _ = X.shape
    src, dst = edge_index[0], edge_index[1]
    adj = jnp.zeros((N, N), jnp.float32).at[dst, src].add(1.0).astype(jnp.bfloat16)
    Xc = X.astype(jnp.bfloat16)
    Y = None
    for p in params:
        S = jnp.einsum("ts,sjd->tjd", adj, Xc, preferred_element_type=jnp.float32)
        Z = S + (1.0 + p["eps"][0]) * Xc.astype(jnp.float32)
        H = jnp.einsum("njd,dh->njh", Z.astype(jnp.bfloat16),
                       p["w1"].astype(jnp.bfloat16),
                       preferred_element_type=jnp.float32) + p["b1"]
        H = jnp.maximum(H, 0.0)
        Y = jnp.einsum("njh,ho->njo", H.astype(jnp.bfloat16),
                       p["w2"].astype(jnp.bfloat16),
                       preferred_element_type=jnp.float32) + p["b2"]
        Xc = Y.astype(jnp.bfloat16)
    return jnp.sum(Y * mask[:, :, None], axis=1)


# ------------------------------------- main ---------------------------------------

if __name__ == "__main__":
    key = jax.random.PRNGKey(0)
    n_layers, in_dim, hidden_dim, out_dim = 2, 4, 32, 32
    sizes = [6, 10]  # two graphs; W_i is [n_i, n_i, in_dim]

    k1, k2, kp = jax.random.split(key, 3)
    W_list = [
        jax.random.normal(k1, (sizes[0], sizes[0], in_dim), jnp.float32),
        jax.random.normal(k2, (sizes[1], sizes[1], in_dim), jnp.float32),
    ]

    # Deterministic bidirectional ring edges within each graph.
    edges, off = [], 0
    for n in sizes:
        for i in range(n):
            j = (i + 1) % n
            edges.append((off + i, off + j))
            edges.append((off + j, off + i))
        off += n
    edge_index = jnp.asarray(edges, dtype=jnp.int32).T  # [2, E]

    params = init_gin_params(kp, n_layers, in_dim, hidden_dim, out_dim)

    pe = gin_phi_forward(W_list, edge_index, params)
    pe = jax.block_until_ready(pe)

    ref = gin_phi_reference(W_list, edge_index, params)
    assert pe.shape == (sum(sizes), out_dim), pe.shape
    assert bool(jnp.all(jnp.isfinite(pe)))
    max_err = float(jnp.max(jnp.abs(pe - ref)))
    assert bool(jnp.allclose(pe, ref, rtol=2e-2, atol=2e-2)), max_err

    print("KERNEL_OK")
</pallas_src>

<mosaic_0001>
module attributes {stable_mosaic.version = 11 : i64} {
  func.func @_gin_layer_kernel(%arg0: i32, %arg1: i32, %arg2: memref<1x1xf32, #tpu.memory_space<smem>>, %arg3: memref<16x16xbf16, #tpu.memory_space<vmem>>, %arg4: memref<16x1280xbf16, #tpu.memory_space<vmem>>, %arg5: memref<16x1280xbf16, #tpu.memory_space<vmem>>, %arg6: memref<128x128xbf16, #tpu.memory_space<vmem>>, %arg7: memref<1x128xf32, #tpu.memory_space<vmem>>, %arg8: memref<128x128xbf16, #tpu.memory_space<vmem>>, %arg9: memref<1x128xf32, #tpu.memory_space<vmem>>, %arg10: memref<16x1280xbf16, #tpu.memory_space<vmem>>, %arg11: memref<16x1280xf32, #tpu.memory_space<vmem>>) attributes {dimension_semantics = [#tpu.dimension_semantics<parallel>, #tpu.dimension_semantics<arbitrary>], iteration_bounds = array<i64: 1, 1>, scalar_prefetch = 0 : i64, scratch_operands = 1 : i64, tpu.core_type = #tpu.core_type<tc>, window_params = [{transform_indices = @transform_0, window_bounds = array<i64: 1, 1>}, {transform_indices = @transform_1, window_bounds = array<i64: 16, 16>}, {transform_indices = @transform_2, window_bounds = array<i64: 16, 1280>}, {transform_indices = @transform_3, window_bounds = array<i64: 16, 1280>}, {pipeline_mode = #tpu.pipeline_mode<synchronous>, transform_indices = @transform_4, window_bounds = array<i64: 128, 128>}, {pipeline_mode = #tpu.pipeline_mode<synchronous>, transform_indices = @transform_5, window_bounds = array<i64: 1, 128>}, {pipeline_mode = #tpu.pipeline_mode<synchronous>, transform_indices = @transform_6, window_bounds = array<i64: 128, 128>}, {pipeline_mode = #tpu.pipeline_mode<synchronous>, transform_indices = @transform_7, window_bounds = array<i64: 1, 128>}, {transform_indices = @transform_8, window_bounds = array<i64: 16, 1280>}]} {
    %c0_i32 = arith.constant 0 : i32
    %0 = arith.cmpi eq, %arg1, %c0_i32 : i32
    %1 = arith.extui %0 : i1 to i32
    %c0_i32_0 = arith.constant 0 : i32
    %2 = arith.cmpi ne, %1, %c0_i32_0 : i32
    scf.if %2 {
      %cst_10 = arith.constant 0.000000e+00 : f32
      %12 = vector.broadcast %cst_10 : f32 to vector<16x1280xf32>
      %c0_11 = arith.constant 0 : index
      %c0_12 = arith.constant 0 : index
      %13 = vector.load %arg11[%c0_11, %c0_12] : memref<16x1280xf32, #tpu.memory_space<vmem>>, vector<16x1280xf32>
      tpu.vector_store %arg11[%c0_11, %c0_12], %12 {strides = array<i32>} : memref<16x1280xf32, #tpu.memory_space<vmem>>, vector<16x1280xf32>,
    } else {
    }
    %c0 = arith.constant 0 : index
    %c0_1 = arith.constant 0 : index
    %3 = vector.load %arg11[%c0, %c0_1] : memref<16x1280xf32, #tpu.memory_space<vmem>>, vector<16x1280xf32>
    %c0_2 = arith.constant 0 : index
    %c0_3 = arith.constant 0 : index
    %4 = vector.load %arg3[%c0_2, %c0_3] : memref<16x16xbf16, #tpu.memory_space<vmem>>, vector<16x16xbf16>
    %c0_4 = arith.constant 0 : index
    %c0_5 = arith.constant 0 : index
    %5 = vector.load %arg4[%c0_4, %c0_5] : memref<16x1280xbf16, #tpu.memory_space<vmem>>, vector<16x1280xbf16>
    %cst = arith.constant dense<0.000000e+00> : vector<16x1280xf32>
    %6 = tpu.matmul %4, %5, %cst {dimension_numbers = #tpu.dot_dimension_numbers<[1], [0], [0], [1], [0, 0, 1, 1], [], []>} : vector<16x16xbf16>, vector<16x1280xbf16>, vector<16x1280xf32> -> vector<16x1280xf32>
    %7 = arith.addf %3, %6 : vector<16x1280xf32>
    %c0_6 = arith.constant 0 : index
    %c0_7 = arith.constant 0 : index
    %8 = vector.load %arg11[%c0_6, %c0_7] : memref<16x1280xf32, #tpu.memory_space<vmem>>, vector<16x1280xf32>
    tpu.vector_store %arg11[%c0_6, %c0_7], %7 {strides = array<i32>} : memref<16x1280xf32, #tpu.memory_space<vmem>>, vector<16x1280xf32>,
    %c0_i32_8 = arith.constant 0 : i32
    %9 = arith.cmpi eq, %arg1, %c0_i32_8 : i32
    %10 = arith.extui %9 : i1 to i32
    %c0_i32_9 = arith.constant 0 : i32
    %11 = arith.cmpi ne, %10, %c0_i32_9 : i32
    scf.if %11 {
      %c0_10 = arith.constant 0 : index
      %c0_11 = arith.constant 0 : index
      %12 = memref.load %arg2[%c0_10, %c0_11] : memref<1x1xf32, #tpu.memory_space<smem>>
      %cst_12 = arith.constant 1.000000e+00 : f32
      %13 = arith.addf %cst_12, %12 : f32
      %c0_13 = arith.constant 0 : index
      %c0_14 = arith.constant 0 : index
      %14 = vector.load %arg6[%c0_13, %c0_14] : memref<128x128xbf16, #tpu.memory_space<vmem>>, vector<128x128xbf16>
      %c0_15 = arith.constant 0 : index
      %c0_16 = arith.constant 0 : index
      %15 = vector.load %arg7[%c0_15, %c0_16] : memref<1x128xf32, #tpu.memory_space<vmem>>, vector<1x128xf32>
      %c0_17 = arith.constant 0 : index
      %c0_18 = arith.constant 0 : index
      %16 = vector.load %arg8[%c0_17, %c0_18] : memref<128x128xbf16, #tpu.memory_space<vmem>>, vector<128x128xbf16>
      %c0_19 = arith.constant 0 : index
      %c0_20 = arith.constant 0 : index
      %17 = vector.load %arg9[%c0_19, %c0_20] : memref<1x128xf32, #tpu.memory_space<vmem>>, vector<1x128xf32>
      %c0_21 = arith.constant 0 : index
      %c0_22 = arith.constant 0 : index
      %18 = vector.load %arg11[%c0_21, %c0_22] : memref<16x1280xf32, #tpu.memory_space<vmem>>, vector<16x128xf32>
      %c0_23 = arith.constant 0 : index
      %c0_24 = arith.constant 0 : index
      %19 = vector.load %arg5[%c0_23, %c0_24] : memref<16x1280xbf16, #tpu.memory_space<vmem>>, vector<16x128xbf16>
      %20 = arith.extf %19 : vector<16x128xbf16> to vector<16x128xf32>
      %21 = vector.broadcast %13 : f32 to vector<16x128xf32>
      %22 = arith.mulf %21, %20 : vector<16x128xf32>
      %23 = arith.addf %18, %22 : vector<16x128xf32>
      %24 = arith.truncf %23 : vector<16x128xf32> to vector<16x128xbf16>
      %cst_25 = arith.constant dense<0.000000e+00> : vector<16x128xf32>
      %25 = tpu.matmul %24, %14, %cst_25 {dimension_numbers = #tpu.dot_dimension_numbers<[1], [0], [0], [1], [0, 0, 1, 1], [], []>} : vector<16x128xbf16>, vector<128x128xbf16>, vector<16x128xf32> -> vector<16x128xf32>
      %26 = vector.broadcast %15 : vector<1x128xf32> to vector<16x128xf32>
      %27 = arith.addf %25, %26 : vector<16x128xf32>
      %cst_26 = arith.constant 0.000000e+00 : f32
      %28 = vector.broadcast %cst_26 : f32 to vector<16x128xf32>
      %29 = arith.maximumf %27, %28 : vector<16x128xf32>
      %30 = arith.truncf %29 : vector<16x128xf32> to vector<16x128xbf16>
      %cst_27 = arith.constant dense<0.000000e+00> : vector<16x128xf32>
      %31 = tpu.matmul %30, %16, %cst_27 {dimension_numbers = #tpu.dot_dimension_numbers<[1], [0], [0], [1], [0, 0, 1, 1], [], []>} : vector<16x128xbf16>, vector<128x128xbf16>, vector<16x128xf32> -> vector<16x128xf32>
      %32 = vector.broadcast %17 : vector<1x128xf32> to vector<16x128xf32>
      %33 = arith.addf %31, %32 : vector<16x128xf32>
      %34 = arith.truncf %33 : vector<16x128xf32> to vector<16x128xbf16>
      %c0_28 = arith.constant 0 : index
      %c0_29 = arith.constant 0 : index
      %35 = vector.load %arg10[%c0_28, %c0_29] : memref<16x1280xbf16, #tpu.memory_space<vmem>>, vector<16x128xbf16>
      tpu.vector_store %arg10[%c0_28, %c0_29], %34 {strides = array<i32>} : memref<16x1280xbf16, #tpu.memory_space<vmem>>, vector<16x128xbf16>,
      %c0_30 = arith.constant 0 : index
      %c128 = arith.constant 128 : index
      %36 = vector.load %arg11[%c0_30, %c128] : memref<16x1280xf32, #tpu.memory_space<vmem>>, vector<16x128xf32>
      %c0_31 = arith.constant 0 : index
      %c128_32 = arith.constant 128 : index
      %37 = vector.load %arg5[%c0_31, %c128_32] : memref<16x1280xbf16, #tpu.memory_space<vmem>>, vector<16x128xbf16>
      %38 = arith.extf %37 : vector<16x128xbf16> to vector<16x128xf32>
      %39 = vector.broadcast %13 : f32 to vector<16x128xf32>
      %40 = arith.mulf %39, %38 : vector<16x128xf32>
      %41 = arith.addf %36, %40 : vector<16x128xf32>
      %42 = arith.truncf %41 : vector<16x128xf32> to vector<16x128xbf16>
      %cst_33 = arith.constant dense<0.000000e+00> : vector<16x128xf32>
      %43 = tpu.matmul %42, %14, %cst_33 {dimension_numbers = #tpu.dot_dimension_numbers<[1], [0], [0], [1], [0, 0, 1, 1], [], []>} : vector<16x128xbf16>, vector<128x128xbf16>, vector<16x128xf32> -> vector<16x128xf32>
      %44 = vector.broadcast %15 : vector<1x128xf32> to vector<16x128xf32>
      %45 = arith.addf %43, %44 : vector<16x128xf32>
      %cst_34 = arith.constant 0.000000e+00 : f32
      %46 = vector.broadcast %cst_34 : f32 to vector<16x128xf32>
      %47 = arith.maximumf %45, %46 : vector<16x128xf32>
      %48 = arith.truncf %47 : vector<16x128xf32> to vector<16x128xbf16>
      %cst_35 = arith.constant dense<0.000000e+00> : vector<16x128xf32>
      %49 = tpu.matmul %48, %16, %cst_35 {dimension_numbers = #tpu.dot_dimension_numbers<[1], [0], [0], [1], [0, 0, 1, 1], [], []>} : vector<16x128xbf16>, vector<128x128xbf16>, vector<16x128xf32> -> vector<16x128xf32>
      %50 = vector.broadcast %17 : vector<1x128xf32> to vector<16x128xf32>
      %51 = arith.addf %49, %50 : vector<16x128xf32>
      %52 = arith.truncf %51 : vector<16x128xf32> to vector<16x128xbf16>
      %c0_36 = arith.constant 0 : index
      %c128_37 = arith.constant 128 : index
      %53 = vector.load %arg10[%c0_36, %c128_37] : memref<16x1280xbf16, #tpu.memory_space<vmem>>, vector<16x128xbf16>
      tpu.vector_store %arg10[%c0_36, %c128_37], %52 {strides = array<i32>} : memref<16x1280xbf16, #tpu.memory_space<vmem>>, vector<16x128xbf16>,
      %c0_38 = arith.constant 0 : index
      %c256 = arith.constant 256 : index
      %54 = vector.load %arg11[%c0_38, %c256] : memref<16x1280xf32, #tpu.memory_space<vmem>>, vector<16x128xf32>
      %c0_39 = arith.constant 0 : index
      %c256_40 = arith.constant 256 : index
      %55 = vector.load %arg5[%c0_39, %c256_40] : memref<16x1280xbf16, #tpu.memory_space<vmem>>, vector<16x128xbf16>
      %56 = arith.extf %55 : vector<16x128xbf16> to vector<16x128xf32>
      %57 = vector.broadcast %13 : f32 to vector<16x128xf32>
      %58 = arith.mulf %57, %56 : vector<16x128xf32>
      %59 = arith.addf %54, %58 : vector<16x128xf32>
      %60 = arith.truncf %59 : vector<16x128xf32> to vector<16x128xbf16>
      %cst_41 = arith.constant dense<0.000000e+00> : vector<16x128xf32>
      %61 = tpu.matmul %60, %14, %cst_41 {dimension_numbers = #tpu.dot_dimension_numbers<[1], [0], [0], [1], [0, 0, 1, 1], [], []>} : vector<16x128xbf16>, vector<128x128xbf16>, vector<16x128xf32> -> vector<16x128xf32>
      %62 = vector.broadcast %15 : vector<1x128xf32> to vector<16x128xf32>
      %63 = arith.addf %61, %62 : vector<16x128xf32>
      %cst_42 = arith.constant 0.000000e+00 : f32
      %64 = vector.broadcast %cst_42 : f32 to vector<16x128xf32>
      %65 = arith.maximumf %63, %64 : vector<16x128xf32>
      %66 = arith.truncf %65 : vector<16x128xf32> to vector<16x128xbf16>
      %cst_43 = arith.constant dense<0.000000e+00> : vector<16x128xf32>
      %67 = tpu.matmul %66, %16, %cst_43 {dimension_numbers = #tpu.dot_dimension_numbers<[1], [0], [0], [1], [0, 0, 1, 1], [], []>} : vector<16x128xbf16>, vector<128x128xbf16>, vector<16x128xf32> -> vector<16x128xf32>
      %68 = vector.broadcast %17 : vector<1x128xf32> to vector<16x128xf32>
      %69 = arith.addf %67, %68 : vector<16x128xf32>
      %70 = arith.truncf %69 : vector<16x128xf32> to vector<16x128xbf16>
      %c0_44 = arith.constant 0 : index
      %c256_45 = arith.constant 256 : index
      %71 = vector.load %arg10[%c0_44, %c256_45] : memref<16x1280xbf16, #tpu.memory_space<vmem>>, vector<16x128xbf16>
      tpu.vector_store %arg10[%c0_44, %c256_45], %70 {strides = array<i32>} : memref<16x1280xbf16, #tpu.memory_space<vmem>>, vector<16x128xbf16>,
      %c0_46 = arith.constant 0 : index
      %c384 = arith.constant 384 : index
      %72 = vector.load %arg11[%c0_46, %c384] : memref<16x1280xf32, #tpu.memory_space<vmem>>, vector<16x128xf32>
      %c0_47 = arith.constant 0 : index
      %c384_48 = arith.constant 384 : index
      %73 = vector.load %arg5[%c0_47, %c384_48] : memref<16x1280xbf16, #tpu.memory_space<vmem>>, vector<16x128xbf16>
      %74 = arith.extf %73 : vector<16x128xbf16> to vector<16x128xf32>
      %75 = vector.broadcast %13 : f32 to vector<16x128xf32>
      %76 = arith.mulf %75, %74 : vector<16x128xf32>
      %77 = arith.addf %72, %76 : vector<16x128xf32>
      %78 = arith.truncf %77 : vector<16x128xf32> to vector<16x128xbf16>
      %cst_49 = arith.constant dense<0.000000e+00> : vector<16x128xf32>
      %79 = tpu.matmul %78, %14, %cst_49 {dimension_numbers = #tpu.dot_dimension_numbers<[1], [0], [0], [1], [0, 0, 1, 1], [], []>} : vector<16x128xbf16>, vector<128x128xbf16>, vector<16x128xf32> -> vector<16x128xf32>
      %80 = vector.broadcast %15 : vector<1x128xf32> to vector<16x128xf32>
      %81 = arith.addf %79, %80 : vector<16x128xf32>
      %cst_50 = arith.constant 0.000000e+00 : f32
      %82 = vector.broadcast %cst_50 : f32 to vector<16x128xf32>
      %83 = arith.maximumf %81, %82 : vector<16x128xf32>
      %84 = arith.truncf %83 : vector<16x128xf32> to vector<16x128xbf16>
      %cst_51 = arith.constant dense<0.000000e+00> : vector<16x128xf32>
      %85 = tpu.matmul %84, %16, %cst_51 {dimension_numbers = #tpu.dot_dimension_numbers<[1], [0], [0], [1], [0, 0, 1, 1], [], []>} : vector<16x128xbf16>, vector<128x128xbf16>, vector<16x128xf32> -> vector<16x128xf32>
      %86 = vector.broadcast %17 : vector<1x128xf32> to vector<16x128xf32>
      %87 = arith.addf %85, %86 : vector<16x128xf32>
      %88 = arith.truncf %87 : vector<16x128xf32> to vector<16x128xbf16>
      %c0_52 = arith.constant 0 : index
      %c384_53 = arith.constant 384 : index
      %89 = vector.load %arg10[%c0_52, %c384_53] : memref<16x1280xbf16, #tpu.memory_space<vmem>>, vector<16x128xbf16>
      tpu.vector_store %arg10[%c0_52, %c384_53], %88 {strides = array<i32>} : memref<16x1280xbf16, #tpu.memory_space<vmem>>, vector<16x128xbf16>,
      %c0_54 = arith.constant 0 : index
      %c512 = arith.constant 512 : index
      %90 = vector.load %arg11[%c0_54, %c512] : memref<16x1280xf32, #tpu.memory_space<vmem>>, vector<16x128xf32>
      %c0_55 = arith.constant 0 : index
      %c512_56 = arith.constant 512 : index
      %91 = vector.load %arg5[%c0_55, %c512_56] : memref<16x1280xbf16, #tpu.memory_space<vmem>>, vector<16x128xbf16>
      %92 = arith.extf %91 : vector<16x128xbf16> to vector<16x128xf32>
      %93 = vector.broadcast %13 : f32 to vector<16x128xf32>
      %94 = arith.mulf %93, %92 : vector<16x128xf32>
      %95 = arith.addf %90, %94 : vector<16x128xf32>
      %96 = arith.truncf %95 : vector<16x128xf32> to vector<16x128xbf16>
      %cst_57 = arith.constant dense<0.000000e+00> : vector<16x128xf32>
      %97 = tpu.matmul %96, %14, %cst_57 {dimension_numbers = #tpu.dot_dimension_numbers<[1], [0], [0], [1], [0, 0, 1, 1], [], []>} : vector<16x128xbf16>, vector<128x128xbf16>, vector<16x128xf32> -> vector<16x128xf32>
      %98 = vector.broadcast %15 : vector<1x128xf32> to vector<16x128xf32>
      %99 = arith.addf %97, %98 : vector<16x128xf32>
      %cst_58 = arith.constant 0.000000e+00 : f32
      %100 = vector.broadcast %cst_58 : f32 to vector<16x128xf32>
      %101 = arith.maximumf %99, %100 : vector<16x128xf32>
      %102 = arith.truncf %101 : vector<16x128xf32> to vector<16x128xbf16>
      %cst_59 = arith.constant dense<0.000000e+00> : vector<16x128xf32>
      %103 = tpu.matmul %102, %16, %cst_59 {dimension_numbers = #tpu.dot_dimension_numbers<[1], [0], [0], [1], [0, 0, 1, 1], [], []>} : vector<16x128xbf16>, vector<128x128xbf16>, vector<16x128xf32> -> vector<16x128xf32>
      %104 = vector.broadcast %17 : vector<1x128xf32> to vector<16x128xf32>
      %105 = arith.addf %103, %104 : vector<16x128xf32>
      %106 = arith.truncf %105 : vector<16x128xf32> to vector<16x128xbf16>
      %c0_60 = arith.constant 0 : index
      %c512_61 = arith.constant 512 : index
      %107 = vector.load %arg10[%c0_60, %c512_61] : memref<16x1280xbf16, #tpu.memory_space<vmem>>, vector<16x128xbf16>
      tpu.vector_store %arg10[%c0_60, %c512_61], %106 {strides = array<i32>} : memref<16x1280xbf16, #tpu.memory_space<vmem>>, vector<16x128xbf16>,
      %c0_62 = arith.constant 0 : index
      %c640 = arith.constant 640 : index
      %108 = vector.load %arg11[%c0_62, %c640] : memref<16x1280xf32, #tpu.memory_space<vmem>>, vector<16x128xf32>
      %c0_63 = arith.constant 0 : index
      %c640_64 = arith.constant 640 : index
      %109 = vector.load %arg5[%c0_63, %c640_64] : memref<16x1280xbf16, #tpu.memory_space<vmem>>, vector<16x128xbf16>
      %110 = arith.extf %109 : vector<16x128xbf16> to vector<16x128xf32>
      %111 = vector.broadcast %13 : f32 to vector<16x128xf32>
      %112 = arith.mulf %111, %110 : vector<16x128xf32>
      %113 = arith.addf %108, %112 : vector<16x128xf32>
      %114 = arith.truncf %113 : vector<16x128xf32> to vector<16x128xbf16>
      %cst_65 = arith.constant dense<0.000000e+00> : vector<16x128xf32>
      %115 = tpu.matmul %114, %14, %cst_65 {dimension_numbers = #tpu.dot_dimension_numbers<[1], [0], [0], [1], [0, 0, 1, 1], [], []>} : vector<16x128xbf16>, vector<128x128xbf16>, vector<16x128xf32> -> vector<16x128xf32>
      %116 = vector.broadcast %15 : vector<1x128xf32> to vector<16x128xf32>
      %117 = arith.addf %115, %116 : vector<16x128xf32>
      %cst_66 = arith.constant 0.000000e+00 : f32
      %118 = vector.broadcast %cst_66 : f32 to vector<16x128xf32>
      %119 = arith.maximumf %117, %118 : vector<16x128xf32>
      %120 = arith.truncf %119 : vector<16x128xf32> to vector<16x128xbf16>
      %cst_67 = arith.constant dense<0.000000e+00> : vector<16x128xf32>
      %121 = tpu.matmul %120, %16, %cst_67 {dimension_numbers = #tpu.dot_dimension_numbers<[1], [0], [0], [1], [0, 0, 1, 1], [], []>} : vector<16x128xbf16>, vector<128x128xbf16>, vector<16x128xf32> -> vector<16x128xf32>
      %122 = vector.broadcast %17 : vector<1x128xf32> to vector<16x128xf32>
      %123 = arith.addf %121, %122 : vector<16x128xf32>
      %124 = arith.truncf %123 : vector<16x128xf32> to vector<16x128xbf16>
      %c0_68 = arith.constant 0 : index
      %c640_69 = arith.constant 640 : index
      %125 = vector.load %arg10[%c0_68, %c640_69] : memref<16x1280xbf16, #tpu.memory_space<vmem>>, vector<16x128xbf16>
      tpu.vector_store %arg10[%c0_68, %c640_69], %124 {strides = array<i32>} : memref<16x1280xbf16, #tpu.memory_space<vmem>>, vector<16x128xbf16>,
      %c0_70 = arith.constant 0 : index
      %c768 = arith.constant 768 : index
      %126 = vector.load %arg11[%c0_70, %c768] : memref<16x1280xf32, #tpu.memory_space<vmem>>, vector<16x128xf32>
      %c0_71 = arith.constant 0 : index
      %c768_72 = arith.constant 768 : index
      %127 = vector.load %arg5[%c0_71, %c768_72] : memref<16x1280xbf16, #tpu.memory_space<vmem>>, vector<16x128xbf16>
      %128 = arith.extf %127 : vector<16x128xbf16> to vector<16x128xf32>
      %129 = vector.broadcast %13 : f32 to vector<16x128xf32>
      %130 = arith.mulf %129, %128 : vector<16x128xf32>
      %131 = arith.addf %126, %130 : vector<16x128xf32>
      %132 = arith.truncf %131 : vector<16x128xf32> to vector<16x128xbf16>
      %cst_73 = arith.constant dense<0.000000e+00> : vector<16x128xf32>
      %133 = tpu.matmul %132, %14, %cst_73 {dimension_numbers = #tpu.dot_dimension_numbers<[1], [0], [0], [1], [0, 0, 1, 1], [], []>} : vector<16x128xbf16>, vector<128x128xbf16>, vector<16x128xf32> -> vector<16x128xf32>
      %134 = vector.broadcast %15 : vector<1x128xf32> to vector<16x128xf32>
      %135 = arith.addf %133, %134 : vector<16x128xf32>
      %cst_74 = arith.constant 0.000000e+00 : f32
      %136 = vector.broadcast %cst_74 : f32 to vector<16x128xf32>
      %137 = arith.maximumf %135, %136 : vector<16x128xf32>
      %138 = arith.truncf %137 : vector<16x128xf32> to vector<16x128xbf16>
      %cst_75 = arith.constant dense<0.000000e+00> : vector<16x128xf32>
      %139 = tpu.matmul %138, %16, %cst_75 {dimension_numbers = #tpu.dot_dimension_numbers<[1], [0], [0], [1], [0, 0, 1, 1], [], []>} : vector<16x128xbf16>, vector<128x128xbf16>, vector<16x128xf32> -> vector<16x128xf32>
      %140 = vector.broadcast %17 : vector<1x128xf32> to vector<16x128xf32>
      %141 = arith.addf %139, %140 : vector<16x128xf32>
      %142 = arith.truncf %141 : vector<16x128xf32> to vector<16x128xbf16>
      %c0_76 = arith.constant 0 : index
      %c768_77 = arith.constant 768 : index
      %143 = vector.load %arg10[%c0_76, %c768_77] : memref<16x1280xbf16, #tpu.memory_space<vmem>>, vector<16x128xbf16>
      tpu.vector_store %arg10[%c0_76, %c768_77], %142 {strides = array<i32>} : memref<16x1280xbf16, #tpu.memory_space<vmem>>, vector<16x128xbf16>,
      %c0_78 = arith.constant 0 : index
      %c896 = arith.constant 896 : index
      %144 = vector.load %arg11[%c0_78, %c896] : memref<16x1280xf32, #tpu.memory_space<vmem>>, vector<16x128xf32>
      %c0_79 = arith.constant 0 : index
      %c896_80 = arith.constant 896 : index
      %145 = vector.load %arg5[%c0_79, %c896_80] : memref<16x1280xbf16, #tpu.memory_space<vmem>>, vector<16x128xbf16>
      %146 = arith.extf %145 : vector<16x128xbf16> to vector<16x128xf32>
      %147 = vector.broadcast %13 : f32 to vector<16x128xf32>
      %148 = arith.mulf %147, %146 : vector<16x128xf32>
      %149 = arith.addf %144, %148 : vector<16x128xf32>
      %150 = arith.truncf %149 : vector<16x128xf32> to vector<16x128xbf16>
      %cst_81 = arith.constant dense<0.000000e+00> : vector<16x128xf32>
      %151 = tpu.matmul %150, %14, %cst_81 {dimension_numbers = #tpu.dot_dimension_numbers<[1], [0], [0], [1], [0, 0, 1, 1], [], []>} : vector<16x128xbf16>, vector<128x128xbf16>, vector<16x128xf32> -> vector<16x128xf32>
      %152 = vector.broadcast %15 : vector<1x128xf32> to vector<16x128xf32>
      %153 = arith.addf %151, %152 : vector<16x128xf32>
      %cst_82 = arith.constant 0.000000e+00 : f32
      %154 = vector.broadcast %cst_82 : f32 to vector<16x128xf32>
      %155 = arith.maximumf %153, %154 : vector<16x128xf32>
      %156 = arith.truncf %155 : vector<16x128xf32> to vector<16x128xbf16>
      %cst_83 = arith.constant dense<0.000000e+00> : vector<16x128xf32>
      %157 = tpu.matmul %156, %16, %cst_83 {dimension_numbers = #tpu.dot_dimension_numbers<[1], [0], [0], [1], [0, 0, 1, 1], [], []>} : vector<16x128xbf16>, vector<128x128xbf16>, vector<16x128xf32> -> vector<16x128xf32>
      %158 = vector.broadcast %17 : vector<1x128xf32> to vector<16x128xf32>
      %159 = arith.addf %157, %158 : vector<16x128xf32>
      %160 = arith.truncf %159 : vector<16x128xf32> to vector<16x128xbf16>
      %c0_84 = arith.constant 0 : index
      %c896_85 = arith.constant 896 : index
      %161 = vector.load %arg10[%c0_84, %c896_85] : memref<16x1280xbf16, #tpu.memory_space<vmem>>, vector<16x128xbf16>
      tpu.vector_store %arg10[%c0_84, %c896_85], %160 {strides = array<i32>} : memref<16x1280xbf16, #tpu.memory_space<vmem>>, vector<16x128xbf16>,
      %c0_86 = arith.constant 0 : index
      %c1024 = arith.constant 1024 : index
      %162 = vector.load %arg11[%c0_86, %c1024] : memref<16x1280xf32, #tpu.memory_space<vmem>>, vector<16x128xf32>
      %c0_87 = arith.constant 0 : index
      %c1024_88 = arith.constant 1024 : index
      %163 = vector.load %arg5[%c0_87, %c1024_88] : memref<16x1280xbf16, #tpu.memory_space<vmem>>, vector<16x128xbf16>
      %164 = arith.extf %163 : vector<16x128xbf16> to vector<16x128xf32>
      %165 = vector.broadcast %13 : f32 to vector<16x128xf32>
      %166 = arith.mulf %165, %164 : vector<16x128xf32>
      %167 = arith.addf %162, %166 : vector<16x128xf32>
      %168 = arith.truncf %167 : vector<16x128xf32> to vector<16x128xbf16>
      %cst_89 = arith.constant dense<0.000000e+00> : vector<16x128xf32>
      %169 = tpu.matmul %168, %14, %cst_89 {dimension_numbers = #tpu.dot_dimension_numbers<[1], [0], [0], [1], [0, 0, 1, 1], [], []>} : vector<16x128xbf16>, vector<128x128xbf16>, vector<16x128xf32> -> vector<16x128xf32>
      %170 = vector.broadcast %15 : vector<1x128xf32> to vector<16x128xf32>
      %171 = arith.addf %169, %170 : vector<16x128xf32>
      %cst_90 = arith.constant 0.000000e+00 : f32
      %172 = vector.broadcast %cst_90 : f32 to vector<16x128xf32>
      %173 = arith.maximumf %171, %172 : vector<16x128xf32>
      %174 = arith.truncf %173 : vector<16x128xf32> to vector<16x128xbf16>
      %cst_91 = arith.constant dense<0.000000e+00> : vector<16x128xf32>
      %175 = tpu.matmul %174, %16, %cst_91 {dimension_numbers = #tpu.dot_dimension_numbers<[1], [0], [0], [1], [0, 0, 1, 1], [], []>} : vector<16x128xbf16>, vector<128x128xbf16>, vector<16x128xf32> -> vector<16x128xf32>
      %176 = vector.broadcast %17 : vector<1x128xf32> to vector<16x128xf32>
      %177 = arith.addf %175, %176 : vector<16x128xf32>
      %178 = arith.truncf %177 : vector<16x128xf32> to vector<16x128xbf16>
      %c0_92 = arith.constant 0 : index
      %c1024_93 = arith.constant 1024 : index
      %179 = vector.load %arg10[%c0_92, %c1024_93] : memref<16x1280xbf16, #tpu.memory_space<vmem>>, vector<16x128xbf16>
      tpu.vector_store %arg10[%c0_92, %c1024_93], %178 {strides = array<i32>} : memref<16x1280xbf16, #tpu.memory_space<vmem>>, vector<16x128xbf16>,
      %c0_94 = arith.constant 0 : index
      %c1152 = arith.constant 1152 : index
      %180 = vector.load %arg11[%c0_94, %c1152] : memref<16x1280xf32, #tpu.memory_space<vmem>>, vector<16x128xf32>
      %c0_95 = arith.constant 0 : index
      %c1152_96 = arith.constant 1152 : index
      %181 = vector.load %arg5[%c0_95, %c1152_96] : memref<16x1280xbf16, #tpu.memory_space<vmem>>, vector<16x128xbf16>
      %182 = arith.extf %181 : vector<16x128xbf16> to vector<16x128xf32>
      %183 = vector.broadcast %13 : f32 to vector<16x128xf32>
      %184 = arith.mulf %183, %182 : vector<16x128xf32>
      %185 = arith.addf %180, %184 : vector<16x128xf32>
      %186 = arith.truncf %185 : vector<16x128xf32> to vector<16x128xbf16>
      %cst_97 = arith.constant dense<0.000000e+00> : vector<16x128xf32>
      %187 = tpu.matmul %186, %14, %cst_97 {dimension_numbers = #tpu.dot_dimension_numbers<[1], [0], [0], [1], [0, 0, 1, 1], [], []>} : vector<16x128xbf16>, vector<128x128xbf16>, vector<16x128xf32> -> vector<16x128xf32>
      %188 = vector.broadcast %15 : vector<1x128xf32> to vector<16x128xf32>
      %189 = arith.addf %187, %188 : vector<16x128xf32>
      %cst_98 = arith.constant 0.000000e+00 : f32
      %190 = vector.broadcast %cst_98 : f32 to vector<16x128xf32>
      %191 = arith.maximumf %189, %190 : vector<16x128xf32>
      %192 = arith.truncf %191 : vector<16x128xf32> to vector<16x128xbf16>
      %cst_99 = arith.constant dense<0.000000e+00> : vector<16x128xf32>
      %193 = tpu.matmul %192, %16, %cst_99 {dimension_numbers = #tpu.dot_dimension_numbers<[1], [0], [0], [1], [0, 0, 1, 1], [], []>} : vector<16x128xbf16>, vector<128x128xbf16>, vector<16x128xf32> -> vector<16x128xf32>
      %194 = vector.broadcast %17 : vector<1x128xf32> to vector<16x128xf32>
      %195 = arith.addf %193, %194 : vector<16x128xf32>
      %196 = arith.truncf %195 : vector<16x128xf32> to vector<16x128xbf16>
      %c0_100 = arith.constant 0 : index
      %c1152_101 = arith.constant 1152 : index
      %197 = vector.load %arg10[%c0_100, %c1152_101] : memref<16x1280xbf16, #tpu.memory_space<vmem>>, vector<16x128xbf16>
      tpu.vector_store %arg10[%c0_100, %c1152_101], %196 {strides = array<i32>} : memref<16x1280xbf16, #tpu.memory_space<vmem>>, vector<16x128xbf16>,
    } else {
    }
    return
  }
  func.func @transform_0(%arg0: i32, %arg1: i32) -> (i32, i32) {
    %c0_i32 = arith.constant 0 : i32
    %c0_i32_0 = arith.constant 0 : i32
    %c0_i32_1 = arith.constant 0 : i32
    return %c0_i32, %c0_i32_0 : i32, i32
  }
  func.func @transform_1(%arg0: i32, %arg1: i32) -> (i32, i32) {
    %c0_i32 = arith.constant 0 : i32
    return %arg0, %arg1 : i32, i32
  }
  func.func @transform_2(%arg0: i32, %arg1: i32) -> (i32, i32) {
    %c0_i32 = arith.constant 0 : i32
    %c0_i32_0 = arith.constant 0 : i32
    return %arg1, %c0_i32 : i32, i32
  }
  func.func @transform_3(%arg0: i32, %arg1: i32) -> (i32, i32) {
    %c0_i32 = arith.constant 0 : i32
    %c0_i32_0 = arith.constant 0 : i32
    return %arg0, %c0_i32 : i32, i32
  }
  func.func @transform_4(%arg0: i32, %arg1: i32) -> (i32, i32) {
    %c0_i32 = arith.constant 0 : i32
    %c0_i32_0 = arith.constant 0 : i32
    %c0_i32_1 = arith.constant 0 : i32
    return %c0_i32, %c0_i32_0 : i32, i32
  }
  func.func @transform_5(%arg0: i32, %arg1: i32) -> (i32, i32) {
    %c0_i32 = arith.constant 0 : i32
    %c0_i32_0 = arith.constant 0 : i32
    %c0_i32_1 = arith.constant 0 : i32
    return %c0_i32, %c0_i32_0 : i32, i32
  }
  func.func @transform_6(%arg0: i32, %arg1: i32) -> (i32, i32) {
    %c0_i32 = arith.constant 0 : i32
    %c0_i32_0 = arith.constant 0 : i32
    %c0_i32_1 = arith.constant 0 : i32
    return %c0_i32, %c0_i32_0 : i32, i32
  }
  func.func @transform_7(%arg0: i32, %arg1: i32) -> (i32, i32) {
    %c0_i32 = arith.constant 0 : i32
    %c0_i32_0 = arith.constant 0 : i32
    %c0_i32_1 = arith.constant 0 : i32
    return %c0_i32, %c0_i32_0 : i32, i32
  }
  func.func @transform_8(%arg0: i32, %arg1: i32) -> (i32, i32) {
    %c0_i32 = arith.constant 0 : i32
    %c0_i32_0 = arith.constant 0 : i32
    return %arg0, %c0_i32 : i32, i32
  }
}

</mosaic_0001>

<bundles_post_ra>
// kernel: tpu_custom_call.1
= control target key start
LH: loop header
LB: loop body
LE: loop exit
PB: predicated region body
PF: predicated region fallthrough
CT: control target
= control target key end

     0   :  { %14 = vsyncpa [#allocation5], 0  ;;  %s3101_s0 = inlined_call_operand.<no memory space> [shape: f32[1,1], index: 0, kind: input, shape index: {}]   ;;  %s3102_s1 = inlined_call_operand.hbm [shape: bf16[16,16], index: 1, kind: input, shape index: {}]   ;;  %s3103_s2 = inlined_call_operand.hbm [shape: bf16[16,1280], index: 2, kind: input, shape index: {}]   ;;  %s3104_s3 = inlined_call_operand.hbm [shape: bf16[16,1280], index: 3, kind: input, shape index: {}]   ;;  %s3105_s4 = inlined_call_operand.hbm [shape: bf16[128,128], index: 4, kind: input, shape index: {}]   ;;  %s3106_s5 = inlined_call_operand.vmem [shape: f32[1,128], index: 5, kind: input, shape index: {}]   ;;  %s3107_s6 = inlined_call_operand.hbm [shape: bf16[128,128], index: 6, kind: input, shape index: {}]   ;;  %s3108_s7 = inlined_call_operand.vmem [shape: f32[1,128], index: 7, kind: input, shape index: {}]   ;;  %s3109_s8 = inlined_call_operand.hbm [shape: bf16[16,1280], index: 8, kind: output, shape index: {}]  }
   0x1   :  { %15 = vsyncpa [#allocation8], 0 }
   0x2   :  { %16 = vsyncpa [#allocation11], 0 }
   0x3   :  { %17 = vsyncpa [#allocation6], 0  ;;  %s2524_s27 = smov [#allocation7]  }
   0x4   :  { %s37_s28 = sshll.u32 %s2524_s27, 4  ;;  %s38_s28 = int_to_ptr.vmem [resolvable:$true] %s37_s28 }
   0x5   :  { %s2404_s29 = scalar_lea.vmem %s38_s28, 1280  ;;  %p2409_p1 = scmp.lt.s32.totalorder %s38_s28, %s38_s28 }
   0x6   :  { %p2405_p0 = scmp.ne.s32.totalorder %s38_s28, %s2404_s29  ;;  %p2410_p2 = scmp.lt.s32.totalorder %s2404_s29, %s2404_s29 }
   0x8   :  { %p2411_p3 = por %p2410_p2, %p2409_p1 }
   0xa   :  { %p2412_p4 = pnand %p2411_p3, %p2405_p0 }
   0xc   :  { %2415 = shalt.err (!%p2412_p4)
}
   0xd   :  { %s2525_s30 = smov 640   ;;  %s2526_s9 = smov 40  }
   0xe   :  { %43 = dma.hbm_to_vmem [thread:$0]  %s3103_s2, 1280, %s38_s28, [#allocation8], %s2525_s30, %s2525_s30, %s2526_s9  }
   0xf   :  { %s2527_s12 = smov [#allocation10]   ;;  %s2528_s14 = smov [#allocation4]  }
  0x10   :  { %s61_s13 = sshll.u32 %s2527_s12, 4  ;;  %s25_s15 = sshll.u32 %s2528_s14, 4  ;;  %s62_s13 = int_to_ptr.vmem [resolvable:$true] %s61_s13  ;;  %s26_s15 = int_to_ptr.vmem [resolvable:$true] %s25_s15 }
  0x11   :  { %s2424_s16 = scalar_lea.vmem %s62_s13, 1024  ;;  %p2429_p6 = scmp.lt.s32.totalorder %s62_s13, %s62_s13 }
  0x12   :  { %p2425_p5 = scmp.ne.s32.totalorder %s62_s13, %s2424_s16  ;;  %p2430_p7 = scmp.lt.s32.totalorder %s2424_s16, %s2424_s16 }
  0x14   :  { %p2431_p8 = por %p2430_p7, %p2429_p6 }
  0x16   :  { %p2432_p9 = pnand %p2431_p8, %p2425_p5 }
  0x18   :  { %2435 = shalt.err (!%p2432_p9)
}
  0x19   :  { %s2529_s17 = smov 64   ;;  %s2530_s18 = smov 4  }
  0x1a   :  { %67 = dma.hbm_to_vmem [thread:$0]  %s3105_s4, 1024, %s62_s13, [#allocation11], %s2529_s17, %s2529_s17, %s2530_s18  }
  0x1b   :  { %s2444_s2 = scalar_lea.vmem %s26_s15, 128  ;;  %p2449_p11 = scmp.lt.s32.totalorder %s26_s15, %s26_s15 }
  0x1c   :  { %p2445_p10 = scmp.ne.s32.totalorder %s26_s15, %s2444_s2  ;;  %p2450_p12 = scmp.lt.s32.totalorder %s2444_s2, %s2444_s2 }
  0x1e   :  { %p2451_p13 = por %p2450_p12, %p2449_p11 }
  0x20   :  { %p2452_p0 = pnand %p2451_p13, %p2445_p10 }
  0x22   :  { %2455 = shalt.err (!%p2452_p0)
}
  0x23   :  { %31 = dma.hbm_to_vmem [thread:$0]  %s3102_s1, 128, %s26_s15, [#allocation5], %s2529_s17, %s2529_s17, %s2530_s18  }
  0x24   :  { %s2531_s23 = smov [#allocation9]   ;;  %s2532_s25 = smov [#allocation12]  }
  0x25   :  { %s49_s24 = sshll.u32 %s2531_s23, 4  ;;  %s75_s4 = sshll.u32 %s2532_s25, 4  ;;  %s50_s24 = int_to_ptr.vmem [resolvable:$true] %s49_s24  ;;  %s76_s4 = int_to_ptr.vmem [resolvable:$true] %s75_s4 }
  0x26   :  { %s2464_s26 = scalar_lea.vmem %s50_s24, 1280  ;;  %p2469_p2 = scmp.lt.s32.totalorder %s50_s24, %s50_s24 }
  0x27   :  { %p2465_p1 = scmp.ne.s32.totalorder %s50_s24, %s2464_s26  ;;  %p2470_p3 = scmp.lt.s32.totalorder %s2464_s26, %s2464_s26 }
  0x29   :  { %p2471_p4 = por %p2470_p3, %p2469_p2 }
  0x2b   :  { %p2472_p5 = pnand %p2471_p4, %p2465_p1 }
  0x2d   :  { %2475 = shalt.err (!%p2472_p5)
}
  0x2e   :  { %55 = dma.hbm_to_vmem [thread:$0]  %s3104_s3, 1280, %s50_s24, [#allocation8], %s2525_s30, %s2525_s30, %s2526_s9  }
  0x2f   :  { %s2484_s1 = scalar_lea.vmem %s76_s4, 1024  ;;  %p2489_p7 = scmp.lt.s32.totalorder %s76_s4, %s76_s4 }
  0x30   :  { %p2485_p6 = scmp.ne.s32.totalorder %s76_s4, %s2484_s1  ;;  %p2490_p8 = scmp.lt.s32.totalorder %s2484_s1, %s2484_s1 }
  0x32   :  { %p2491_p9 = por %p2490_p8, %p2489_p7 }
  0x34   :  { %p2492_p10 = pnand %p2491_p9, %p2485_p6 }
  0x36   :  { %2495 = shalt.err (!%p2492_p10)
}
  0x37   :  { %81 = dma.hbm_to_vmem [thread:$0]  %s3107_s6, 1024, %s76_s4, [#allocation11], %s2529_s17, %s2529_s17, %s2530_s18  }
  0x38   :  { %2516 = dma.done.wait [#allocation5], 128  }
  0x39   :  { %2517 = vsyncadd [#allocation5], 4294967168 }
  0x3a   :  { %2518 = dma.done.wait [#allocation8], 2560  }
  0x3b   :  { %2519 = vsyncadd [#allocation8], 4294964736 }
  0x3c   :  { %2520 = dma.done.wait [#allocation11], 2048  }
  0x3d   :  { %2521 = vsyncadd [#allocation11], 4294965248  ;;  %v2533_v0 = vmov 0   ;;  %v2364_v1 = vld [vmem:[#allocation7 + $0x4] ss:$40 sps:$4 sm:$0xff]   ;;  %v2367_v3 = vld [vmem:[#allocation4] sm:$0xff]  }
  0x3e   :  { %247 = vmatprep.mubr.bf16.mxu0 %v2533_v0  ;;  %290 = vmatprep.mubr.bf16.mxu1 %v2533_v0  ;;  %v2366_v2 = vld [vmem:[#allocation7] ss:$40 sps:$4 sm:$0xff]   ;;  %vm211_vm0 = vcmask 130048   ;;  %v2368_v4 = vld [vmem:[#allocation7 + $0xc] ss:$40 sps:$4 sm:$0xff]   ;;  %v2534_v10 = vmov 0.0  }
  0x3f   :  { %229 = vmatprep.subr.bf16.mxu0 %v2364_v1  ;;  %v2370_v5 = vld [vmem:[#allocation7 + $0x8] ss:$40 sps:$4 sm:$0xff]   ;;  %v2373_v7 = vld [vmem:[#allocation7 + $0x14] ss:$40 sps:$4 sm:$0xff]   ;;  %272 = vmatprep.subr.bf16.mxu1 %v2368_v4  ;;  %v2374_v8 = vld [vmem:[#allocation7 + $0x18] ss:$40 sps:$4 sm:$0xff]  }
  0x40   :  { %230 = vmatpush1.bf16.msra.mxu0 %v2366_v2  ;;  %v2371_v6 = vld [vmem:[#allocation7 + $0x10] ss:$40 sps:$4 sm:$0xff]   ;;  %273 = vmatpush1.bf16.msra.mxu1 %v2370_v5  ;;  %v2376_v9 = vld [vmem:[#allocation7 + $0x1c] ss:$40 sps:$4 sm:$0xff]   ;;  %v2624_v13 = vld [vmem:[#allocation10 + $0x28] sm:$0xff]   ;;  %vm2535_vm1 = vmmov 0  }
  0x41   :  { %315 = vmatprep.subr.bf16.mxu0 %v2373_v7  ;;  %358 = vmatprep.subr.bf16.mxu1 %v2376_v9  ;;  %v2615_v11 = vld [vmem:[#allocation10 + $0x38] sm:$0xff]   ;;  %v2618_v12 = vld [vmem:[#allocation10 + $0x30] sm:$0xff]   ;;  %v2628_v14 = vld [vmem:[#allocation10 + $0x20] sm:$0xff]   ;;  %s474_s11 = sadd.f32 1.0, %s3101_s0 }
  0x42   :  { %v2632_v15 = vld [vmem:[#allocation10 + $0x18] sm:$0xff]   ;;  %v2636_v16 = vld [vmem:[#allocation10 + $0x10] sm:$0xff]   ;;  %v2641_v17 = vld [vmem:[#allocation10 + $0x8] sm:$0xff]  }
  0x43   :  { %1708 = vmatmul.mubr.msk.bf16.vlgmr.msra.gmra.mxu0 %vm211_vm0, %v2367_v3  ;;  %1709 = vmatmul.mubr.msk.bf16.vlgmr.msra.gmra.mxu1 %vm211_vm0, %v2367_v3  ;;  %v2645_v18 = vld [vmem:[#allocation10] sm:$0xff]   ;;  %v511_v21 = vld [vmem:[#allocation9] sm:$0xff]   ;;  %v512_v22 = vld [vmem:[#allocation9 + $0x28] sm:$0xff]   ;;  %v2658_v25 = vstv %s474_s11 }
  0x44   :  { %333 = vmatprep.mubr.bf16.mxu0 %v2533_v0  ;;  %316 = vmatpush1.bf16.msra.mxu0 %v2371_v6  ;;  %v2387_v19 = vld [vmem:[#allocation7 + $0x24] ss:$40 sps:$4 sm:$0xff]   ;;  %v2385_v20 = vld [vmem:[#allocation7 + $0x20] ss:$40 sps:$4 sm:$0xff]   ;;  %v513_v23 = vunpack.c.l.bf16 %v511_v21  ;;  %v514_v24 = vunpack.c.l.bf16 %v512_v22  ;;  %v729_v34 = vunpack.c.h.bf16 %v512_v22  ;;  %v728_v35 = vunpack.c.h.bf16 %v511_v21  ;;  %v2689_v42 = vld [vmem:[#allocation12 + $0x38] sm:$0xff]  }
  0x45   :  { %359 = vmatpush1.bf16.msra.mxu1 %v2374_v8  ;;  %376 = vmatprep.mubr.bf16.mxu1 %v2533_v0  ;;  %v2695_v43 = vld [vmem:[#allocation12 + $0x30] sm:$0xff]   ;;  %v832_v44 = vld [vmem:[#allocation9 + $0x8] sm:$0xff]   ;;  %v833_v45 = vld [vmem:[#allocation9 + $0x30] sm:$0xff]  }
  0x46   :  { %1951 = vmatprep.subr.bf16.mxu1 %v2534_v10  ;;  %401 = vmatprep.subr.bf16.mxu0 %v2387_v19  ;;  %v516_v27 = vmul.f32 %v2658_v25, %v513_v23  ;;  %v517_v28 = vmul.f32 %v2658_v25, %v514_v24  ;;  %v731_v36 = vmul.f32 %v729_v34, %v2658_v25  ;;  %v2701_v47 = vld [vmem:[#allocation12 + $0x28] sm:$0xff]   ;;  %v834_v48 = vunpack.c.l.bf16 %v832_v44  ;;  %v2707_v51 = vld [vmem:[#allocation12 + $0x20] sm:$0xff]   ;;  %v2715_v55 = vld [vmem:[#allocation12 + $0x18] sm:$0xff]  }
  0x47   :  { %v730_v38 = vmul.f32 %v728_v35, %v2658_v25  ;;  %v835_v49 = vunpack.c.l.bf16 %v833_v45  ;;  %v2721_v58 = vld [vmem:[#allocation12 + $0x10] sm:$0xff]   ;;  %v2730_v60 = vld [vmem:[#allocation12 + $0x8] sm:$0xff]   ;;  %v2736_v61 = vld [vmem:[#allocation12] sm:$0xff]   ;;  %v940_v62 = vunpack.c.h.bf16 %v832_v44  ;;  %v941_v63 = vunpack.c.h.bf16 %v833_v45 }
  0x48   :  { %v836_v52 = vmul.f32 %v834_v48, %v2658_v25  ;;  %v1044_v6 = vld [vmem:[#allocation9 + $0x10] sm:$0xff]   ;;  %v1045_v7 = vld [vmem:[#allocation9 + $0x38] sm:$0xff]  }
  0x49   :  { %v837_v53 = vmul.f32 %v835_v49, %v2658_v25  ;;  %v943_v1 = vmul.f32 %v941_v63, %v2658_v25  ;;  %v1046_v9 = vunpack.c.l.bf16 %v1044_v6  ;;  %v1047_v19 = vunpack.c.l.bf16 %v1045_v7 }
  0x4b   :  { %1710 = vmatmul.mubr.msk.bf16.vlgmr.msra.gmra.mxu0 %vm211_vm0, %v2367_v3  ;;  %1711 = vmatmul.mubr.msk.bf16.vlgmr.msra.gmra.mxu1 %vm211_vm0, %v2367_v3  ;;  %v1048_v21 = vmul.f32 %v1046_v9, %v2658_v25  ;;  %v1049_v22 = vmul.f32 %v1047_v19, %v2658_v25 }
  0x4c   :  { %419 = vmatprep.mubr.bf16.mxu0 %v2533_v0  ;;  %1952 = vmatpush3.bf16.msra.mxu1 %v2615_v11  ;;  %v942_v0 = vmul.f32 %v940_v62, %v2658_v25 }
  0x4d   :  { %1953 = vmatprep.subr.bf16.mxu1 %v2534_v10  ;;  %1967 = vmatprep.mubr.msk.bf16.mxu1 %vm2535_vm1, %v2534_v10 }
  0x4e   :  { %402 = vmatpush1.bf16.msra.mxu0 %v2385_v20 }
  0x4f   :  { %1971 = vmatprep.subr.bf16.mxu0 %v2534_v10 }
  0x50   :  { %1954 = vmatpush3.bf16.msra.mxu1 %v2618_v12 }
  0x51   :  { %1955 = vmatprep.subr.bf16.mxu1 %v2534_v10 }
  0x53   :  { %1712 = vmatmul.mubr.msk.bf16.vlgmr.msra.gmra.mxu0 %vm211_vm0, %v2367_v3 }
  0x54   :  { %1956 = vmatpush3.bf16.msra.mxu1 %v2624_v13  ;;  %1987 = vmatprep.mubr.msk.bf16.mxu0 %vm2535_vm1, %v2534_v10 }
  0x55   :  { %1957 = vmatprep.subr.bf16.mxu1 %v2534_v10  ;;  %1972 = vmatpush3.bf16.msra.mxu0 %v2689_v42 }
  0x56   :  { %1973 = vmatprep.subr.bf16.mxu0 %v2534_v10 }
  0x58   :  { %1958 = vmatpush3.bf16.msra.mxu1 %v2628_v14 }
  0x59   :  { %1959 = vmatprep.subr.bf16.mxu1 %v2534_v10  ;;  %1974 = vmatpush3.bf16.msra.mxu0 %v2695_v43 }
  0x5a   :  { %1975 = vmatprep.subr.bf16.mxu0 %v2534_v10 }
  0x5c   :  { %1960 = vmatpush3.bf16.msra.mxu1 %v2632_v15 }
  0x5d   :  { %1961 = vmatprep.subr.bf16.mxu1 %v2534_v10  ;;  %1976 = vmatpush3.bf16.msra.mxu0 %v2701_v47 }
  0x5e   :  { %1977 = vmatprep.subr.bf16.mxu0 %v2534_v10 }
  0x60   :  { %1962 = vmatpush3.bf16.msra.mxu1 %v2636_v16 }
  0x61   :  { %1963 = vmatprep.subr.bf16.mxu1 %v2534_v10  ;;  %1978 = vmatpush3.bf16.msra.mxu0 %v2707_v51 }
  0x62   :  { %1979 = vmatprep.subr.bf16.mxu0 %v2534_v10 }
  0x64   :  { %1964 = vmatpush3.bf16.msra.mxu1 %v2641_v17 }
  0x65   :  { %1965 = vmatprep.subr.bf16.mxu1 %v2534_v10  ;;  %1980 = vmatpush3.bf16.msra.mxu0 %v2715_v55 }
  0x66   :  { %1981 = vmatprep.subr.bf16.mxu0 %v2534_v10 }
  0x68   :  { %1966 = vmatpush3.bf16.msra.mxu1 %v2645_v18 }
  0x69   :  { %1991 = vmatprep.subr.bf16.mxu1 %v2534_v10  ;;  %1982 = vmatpush3.bf16.msra.mxu0 %v2721_v58 }
  0x6a   :  { %1983 = vmatprep.subr.bf16.mxu0 %v2534_v10 }
  0x6d   :  { %1984 = vmatpush3.bf16.msra.mxu0 %v2730_v60 }
  0x6e   :  { %1985 = vmatprep.subr.bf16.mxu0 %v2534_v10 }
  0x71   :  { %1986 = vmatpush3.bf16.msra.mxu0 %v2736_v61 }
  0x72   :  { %2011 = vmatprep.subr.bf16.mxu0 %v2534_v10 }
 0x103   :  { %v249_v26 = vpop.f32.mrf.mxu0  ;;  %v292_v46 = vpop.f32.mrf.mxu1 }
 0x104   :  { %v518_v31 = vadd.f32 %v516_v27, %v249_v26  ;;  %v838_v56 = vadd.f32 %v836_v52, %v292_v46 }
 0x105   :  { %v251_v29 = vpop.f32.mrf.mxu0  ;;  %v294_v50 = vpop.f32.mrf.mxu1 }
 0x106   :  { %v732_v40 = vadd.f32 %v730_v38, %v251_v29  ;;  %v944_v3 = vadd.f32 %v942_v0, %v294_v50  ;;  %v1153_v29 = vunpack.c.h.bf16 %v1045_v7 }
 0x107   :  { %v253_v30 = vpop.f32.mrf.mxu0  ;;  %v296_v54 = vpop.f32.mrf.mxu1 }
 0x108   :  { %v519_v32 = vadd.f32 %v517_v28, %v253_v30  ;;  %v839_v57 = vadd.f32 %v837_v53, %v296_v54  ;;  %v1152_v28 = vunpack.c.h.bf16 %v1044_v6  ;;  %v2817_v53 = vld [vmem:[%s3106_s5] ss:$0 sm:$0xff] }
 0x109   :  { %v255_v37 = vpop.f32.mrf.mxu0  ;;  %v298_v2 = vpop.f32.mrf.mxu1 }
 0x10a   :  { %v520_v33 = vpack.c.bf16 %v519_v32, %v518_v31  ;;  %v733_v39 = vadd.f32 %v731_v36, %v255_v37  ;;  %v840_v59 = vpack.c.bf16 %v839_v57, %v838_v56  ;;  %v945_v4 = vadd.f32 %v943_v1, %v298_v2  ;;  %v1256_v36 = vld [vmem:[#allocation9 + $0x18] sm:$0xff]   ;;  %v1257_v37 = vld [vmem:[#allocation9 + $0x40] sm:$0xff]  }
 0x10b   :  { %v335_v8 = vpop.f32.mrf.mxu0  ;;  %v1154_v30 = vmul.f32 %v1152_v28, %v2658_v25  ;;  %v1155_v31 = vmul.f32 %v1153_v29, %v2658_v25  ;;  %v378_v38 = vpop.f32.mrf.mxu1  ;;  %v2875_v29 = vld [vmem:[#allocation9 + $0x20] sm:$0xff]  }
 0x10c   :  { %1968 = vmatmul.mubr.bf16.vlgmr.msra.gmra.mxu1 %v520_v33  ;;  %v734_v41 = vpack.c.bf16 %v733_v39, %v732_v40  ;;  %v946_v5 = vpack.c.bf16 %v945_v4, %v944_v3  ;;  %v1050_v24 = vadd.f32 %v1048_v21, %v335_v8  ;;  %v1258_v39 = vunpack.c.l.bf16 %v1256_v36 }
 0x10d   :  { %1992 = vmatpush3.bf16.msra.mxu1 %v2615_v11  ;;  %2007 = vmatprep.mubr.msk.bf16.mxu1 %vm2535_vm1, %v2534_v10  ;;  %v337_v20 = vpop.f32.mrf.mxu0  ;;  %v1259_v40 = vunpack.c.l.bf16 %v1257_v37  ;;  %v1364_v3 = vunpack.c.h.bf16 %v1256_v36  ;;  %v1365_v4 = vunpack.c.h.bf16 %v1257_v37 }
 0x10e   :  { %1993 = vmatprep.subr.bf16.mxu1 %v2534_v10  ;;  %v1156_v33 = vadd.f32 %v1154_v30, %v337_v20  ;;  %v1260_v44 = vmul.f32 %v1258_v39, %v2658_v25  ;;  %v2877_v30 = vld [vmem:[#allocation9 + $0x48] sm:$0xff]  }
 0x10f   :  { %v339_v23 = vpop.f32.mrf.mxu0  ;;  %v1261_v45 = vmul.f32 %v1259_v40, %v2658_v25  ;;  %v1367_v6 = vmul.f32 %v1365_v4, %v2658_v25 }
 0x110   :  { %v1051_v26 = vadd.f32 %v1049_v22, %v339_v23  ;;  %v1262_v48 = vadd.f32 %v1260_v44, %v378_v38 }
 0x111   :  { %1994 = vmatpush3.bf16.msra.mxu1 %v2618_v12  ;;  %v341_v32 = vpop.f32.mrf.mxu0 }
 0x112   :  { %1995 = vmatprep.subr.bf16.mxu1 %v2534_v10  ;;  %v1052_v27 = vpack.c.bf16 %v1051_v26, %v1050_v24  ;;  %v1157_v34 = vadd.f32 %v1155_v31, %v341_v32  ;;  %v1470_v32 = vunpack.c.l.bf16 %v2875_v29 }
 0x113   :  { %v421_v31 = vpop.f32.mrf.mxu0 }
 0x114   :  { %v1158_v35 = vpack.c.bf16 %v1157_v34, %v1156_v33  ;;  %v1471_v33 = vunpack.c.l.bf16 %v2877_v30 }
 0x115   :  { %1996 = vmatpush3.bf16.msra.mxu1 %v2624_v13  ;;  %v2886_v34 = vpop.f32.mrf.mxu0 }
 0x116   :  { %1997 = vmatprep.subr.bf16.mxu1 %v2534_v10  ;;  %v1473_v36 = vmul.f32 %v1471_v33, %v2658_v25 }
 0x117   :  { %v425_v37 = vpop.f32.mrf.mxu0 }
 0x118   :  { %v1475_v39 = vadd.f32 %v1473_v36, %v425_v37 }
 0x119   :  { %1998 = vmatpush3.bf16.msra.mxu1 %v2628_v14 }
 0x11a   :  { %1999 = vmatprep.subr.bf16.mxu1 %v2534_v10 }
 0x11d   :  { %2000 = vmatpush3.bf16.msra.mxu1 %v2632_v15 }
 0x11e   :  { %2001 = vmatprep.subr.bf16.mxu1 %v2534_v10 }
 0x121   :  { %2002 = vmatpush3.bf16.msra.mxu1 %v2636_v16 }
 0x122   :  { %2003 = vmatprep.subr.bf16.mxu1 %v2534_v10 }
 0x125   :  { %2004 = vmatpush3.bf16.msra.mxu1 %v2641_v17 }
 0x126   :  { %2005 = vmatprep.subr.bf16.mxu1 %v2534_v10 }
 0x129   :  { %2006 = vmatpush3.bf16.msra.mxu1 %v2645_v18 }
 0x12a   :  { %2031 = vmatprep.subr.bf16.mxu1 %v2534_v10 }
 0x12c   :  { %2008 = vmatmul.mubr.bf16.vlgmr.msra.gmra.mxu1 %v734_v41  ;;  %v380_v41 = vpop.f32.mrf.mxu1 }
 0x12d   :  { %2032 = vmatpush3.bf16.msra.mxu1 %v2615_v11  ;;  %2047 = vmatprep.mubr.msk.bf16.mxu1 %vm2535_vm1, %v2534_v10 }
 0x12e   :  { %2033 = vmatprep.subr.bf16.mxu1 %v2534_v10  ;;  %v382_v46 = vpop.f32.mrf.mxu1 }
 0x12f   :  { %v1263_v49 = vadd.f32 %v1261_v45, %v382_v46 }
 0x130   :  { %v384_v52 = vpop.f32.mrf.mxu1 }
 0x131   :  { %2034 = vmatpush3.bf16.msra.mxu1 %v2618_v12  ;;  %v1264_v50 = vpack.c.bf16 %v1263_v49, %v1262_v48  ;;  %v1369_v8 = vadd.f32 %v1367_v6, %v384_v52 }
 0x132   :  { %2035 = vmatprep.subr.bf16.mxu1 %v2534_v10 }
 0x135   :  { %2036 = vmatpush3.bf16.msra.mxu1 %v2624_v13 }
 0x136   :  { %2037 = vmatprep.subr.bf16.mxu1 %v2534_v10 }
 0x139   :  { %2038 = vmatpush3.bf16.msra.mxu1 %v2628_v14 }
 0x13a   :  { %2039 = vmatprep.subr.bf16.mxu1 %v2534_v10 }
 0x13d   :  { %2040 = vmatpush3.bf16.msra.mxu1 %v2632_v15 }
 0x13e   :  { %2041 = vmatprep.subr.bf16.mxu1 %v2534_v10 }
 0x141   :  { %2042 = vmatpush3.bf16.msra.mxu1 %v2636_v16 }
 0x142   :  { %2043 = vmatprep.subr.bf16.mxu1 %v2534_v10 }
 0x145   :  { %2044 = vmatpush3.bf16.msra.mxu1 %v2641_v17 }
 0x146   :  { %2045 = vmatprep.subr.bf16.mxu1 %v2534_v10 }
 0x149   :  { %2046 = vmatpush3.bf16.msra.mxu1 %v2645_v18 }
 0x14a   :  { %2071 = vmatprep.subr.bf16.mxu1 %v2534_v10 }
 0x14c   :  { %2048 = vmatmul.mubr.bf16.vlgmr.msra.gmra.mxu1 %v840_v59 }
 0x14d   :  { %2072 = vmatpush3.bf16.msra.mxu1 %v2615_v11  ;;  %2087 = vmatprep.mubr.msk.bf16.mxu1 %vm2535_vm1, %v2534_v10 }
 0x14e   :  { %2073 = vmatprep.subr.bf16.mxu1 %v2534_v10 }
 0x151   :  { %2074 = vmatpush3.bf16.msra.mxu1 %v2618_v12 }
 0x152   :  { %2075 = vmatprep.subr.bf16.mxu1 %v2534_v10 }
 0x155   :  { %2076 = vmatpush3.bf16.msra.mxu1 %v2624_v13 }
 0x156   :  { %2077 = vmatprep.subr.bf16.mxu1 %v2534_v10 }
 0x159   :  { %2078 = vmatpush3.bf16.msra.mxu1 %v2628_v14 }
 0x15a   :  { %2079 = vmatprep.subr.bf16.mxu1 %v2534_v10 }
 0x15d   :  { %2080 = vmatpush3.bf16.msra.mxu1 %v2632_v15 }
 0x15e   :  { %2081 = vmatprep.subr.bf16.mxu1 %v2534_v10 }
 0x161   :  { %2082 = vmatpush3.bf16.msra.mxu1 %v2636_v16 }
 0x162   :  { %2083 = vmatprep.subr.bf16.mxu1 %v2534_v10 }
 0x165   :  { %2084 = vmatpush3.bf16.msra.mxu1 %v2641_v17 }
 0x166   :  { %2085 = vmatprep.subr.bf16.mxu1 %v2534_v10 }
 0x169   :  { %2086 = vmatpush3.bf16.msra.mxu1 %v2645_v18 }
 0x16a   :  { %2111 = vmatprep.subr.bf16.mxu1 %v2534_v10 }
 0x16c   :  { %2088 = vmatmul.mubr.bf16.vlgmr.msra.gmra.mxu1 %v946_v5  ;;  %v1366_v5 = vmul.f32 %v1364_v3, %v2658_v25 }
 0x16d   :  { %2112 = vmatpush3.bf16.msra.mxu1 %v2615_v11  ;;  %2127 = vmatprep.mubr.msk.bf16.mxu1 %vm2535_vm1, %v2534_v10 }
 0x16e   :  { %2113 = vmatprep.subr.bf16.mxu1 %v2534_v10  ;;  %v1368_v7 = vadd.f32 %v1366_v5, %v380_v41 }
 0x170   :  { %v1370_v9 = vpack.c.bf16 %v1369_v8, %v1368_v7 }
 0x171   :  { %2114 = vmatpush3.bf16.msra.mxu1 %v2618_v12 }
 0x172   :  { %2115 = vmatprep.subr.bf16.mxu1 %v2534_v10 }
 0x175   :  { %2116 = vmatpush3.bf16.msra.mxu1 %v2624_v13 }
 0x176   :  { %2117 = vmatprep.subr.bf16.mxu1 %v2534_v10 }
 0x179   :  { %2118 = vmatpush3.bf16.msra.mxu1 %v2628_v14 }
 0x17a   :  { %2119 = vmatprep.subr.bf16.mxu1 %v2534_v10 }
 0x17d   :  { %2120 = vmatpush3.bf16.msra.mxu1 %v2632_v15 }
 0x17e   :  { %2121 = vmatprep.subr.bf16.mxu1 %v2534_v10 }
 0x181   :  { %2122 = vmatpush3.bf16.msra.mxu1 %v2636_v16 }
 0x182   :  { %2123 = vmatprep.subr.bf16.mxu1 %v2534_v10 }
 0x185   :  { %2124 = vmatpush3.bf16.msra.mxu1 %v2641_v17 }
 0x186   :  { %2125 = vmatprep.subr.bf16.mxu1 %v2534_v10 }
 0x189   :  { %2126 = vmatpush3.bf16.msra.mxu1 %v2645_v18 }
 0x18a   :  { %2151 = vmatprep.subr.bf16.mxu1 %v2534_v10 }
 0x18c   :  { %2128 = vmatmul.mubr.bf16.vlgmr.msra.gmra.mxu1 %v1052_v27 }
 0x18d   :  { %2152 = vmatpush3.bf16.msra.mxu1 %v2615_v11  ;;  %2167 = vmatprep.mubr.msk.bf16.mxu1 %vm2535_vm1, %v2534_v10 }
 0x18e   :  { %2153 = vmatprep.subr.bf16.mxu1 %v2534_v10 }
 0x191   :  { %2154 = vmatpush3.bf16.msra.mxu1 %v2618_v12 }
 0x192   :  { %2155 = vmatprep.subr.bf16.mxu1 %v2534_v10 }
 0x195   :  { %2156 = vmatpush3.bf16.msra.mxu1 %v2624_v13 }
 0x196   :  { %2157 = vmatprep.subr.bf16.mxu1 %v2534_v10 }
 0x199   :  { %2158 = vmatpush3.bf16.msra.mxu1 %v2628_v14 }
 0x19a   :  { %2159 = vmatprep.subr.bf16.mxu1 %v2534_v10 }
 0x19d   :  { %2160 = vmatpush3.bf16.msra.mxu1 %v2632_v15 }
 0x19e   :  { %2161 = vmatprep.subr.bf16.mxu1 %v2534_v10 }
 0x1a1   :  { %2162 = vmatpush3.bf16.msra.mxu1 %v2636_v16 }
 0x1a2   :  { %2163 = vmatprep.subr.bf16.mxu1 %v2534_v10 }
 0x1a5   :  { %2164 = vmatpush3.bf16.msra.mxu1 %v2641_v17 }
 0x1a6   :  { %2165 = vmatprep.subr.bf16.mxu1 %v2534_v10 }
 0x1a9   :  { %2166 = vmatpush3.bf16.msra.mxu1 %v2645_v18 }
 0x1aa   :  { %2191 = vmatprep.subr.bf16.mxu1 %v2534_v10 }
 0x1ac   :  { %2168 = vmatmul.mubr.bf16.vlgmr.msra.gmra.mxu1 %v1158_v35  ;;  %v1472_v35 = vmul.f32 %v1470_v32, %v2658_v25 }
 0x1ad   :  { %2192 = vmatpush3.bf16.msra.mxu1 %v2615_v11  ;;  %2207 = vmatprep.mubr.msk.bf16.mxu1 %vm2535_vm1, %v2534_v10 }
 0x1ae   :  { %2193 = vmatprep.subr.bf16.mxu1 %v2534_v10  ;;  %v1474_v38 = vadd.f32 %v1472_v35, %v421_v31 }
 0x1b0   :  { %v1476_v40 = vpack.c.bf16 %v1475_v39, %v1474_v38 }
 0x1b1   :  { %2194 = vmatpush3.bf16.msra.mxu1 %v2618_v12 }
 0x1b2   :  { %2195 = vmatprep.subr.bf16.mxu1 %v2534_v10 }
 0x1b5   :  { %2196 = vmatpush3.bf16.msra.mxu1 %v2624_v13 }
 0x1b6   :  { %2197 = vmatprep.subr.bf16.mxu1 %v2534_v10 }
 0x1b9   :  { %2198 = vmatpush3.bf16.msra.mxu1 %v2628_v14 }
 0x1ba   :  { %2199 = vmatprep.subr.bf16.mxu1 %v2534_v10 }
 0x1bd   :  { %2200 = vmatpush3.bf16.msra.mxu1 %v2632_v15 }
 0x1be   :  { %2201 = vmatprep.subr.bf16.mxu1 %v2534_v10 }
 0x1c1   :  { %2202 = vmatpush3.bf16.msra.mxu1 %v2636_v16 }
 0x1c2   :  { %2203 = vmatprep.subr.bf16.mxu1 %v2534_v10 }
 0x1c5   :  { %2204 = vmatpush3.bf16.msra.mxu1 %v2641_v17 }
 0x1c6   :  { %2205 = vmatprep.subr.bf16.mxu1 %v2534_v10 }
 0x1c9   :  { %2206 = vmatpush3.bf16.msra.mxu1 %v2645_v18 }
 0x1ca   :  { %2231 = vmatprep.subr.bf16.mxu1 %v2534_v10 }
 0x1cc   :  { %2208 = vmatmul.mubr.bf16.vlgmr.msra.gmra.mxu1 %v1264_v50  ;;  %v609_v54 = vpop.f32.mrf.mxu1 }
 0x1cd   :  { %2232 = vmatpush3.bf16.msra.mxu1 %v2615_v11  ;;  %2247 = vmatprep.mubr.msk.bf16.mxu1 %vm2535_vm1, %v2534_v10  ;;  %v610_v57 = vadd.f32 %v2817_v53, %v609_v54 }
 0x1ce   :  { %v1969_v56 = vpop.f32.mrf.mxu1  ;;  %2233 = vmatprep.subr.bf16.mxu1 %v2534_v10 }
 0x1cf   :  { %v616_v0 = vmax.f32 %v610_v57, 0.0 }
 0x1d0   :  { %v612_v59 = vpop.f32.mrf.mxu1 }
 0x1d1   :  { %v613_v62 = vadd.f32 %v2817_v53, %v612_v59  ;;  %2234 = vmatpush3.bf16.msra.mxu1 %v2618_v12 }
 0x1d2   :  { %v1970_v63 = vpop.f32.mrf.mxu1  ;;  %2235 = vmatprep.subr.bf16.mxu1 %v2534_v10 }
 0x1d3   :  { %v617_v1 = vmax.f32 %v613_v62, 0.0 }
 0x1d5   :  { %v618_v2 = vpack.c.bf16 %v617_v1, %v616_v0  ;;  %2236 = vmatpush3.bf16.msra.mxu1 %v2624_v13 }
 0x1d6   :  { %2237 = vmatprep.subr.bf16.mxu1 %v2534_v10 }
 0x1d7   :  { %1988 = vmatmul.mubr.bf16.vlgmr.msra.gmra.mxu0 %v618_v2 }
 0x1d8   :  { %2012 = vmatpush3.bf16.msra.mxu0 %v2689_v42  ;;  %2027 = vmatprep.mubr.msk.bf16.mxu0 %vm2535_vm1, %v2534_v10 }
 0x1d9   :  { %2238 = vmatpush3.bf16.msra.mxu1 %v2628_v14  ;;  %2013 = vmatprep.subr.bf16.mxu0 %v2534_v10 }
 0x1da   :  { %2239 = vmatprep.subr.bf16.mxu1 %v2534_v10 }
 0x1dc   :  { %2014 = vmatpush3.bf16.msra.mxu0 %v2695_v43 }
 0x1dd   :  { %2240 = vmatpush3.bf16.msra.mxu1 %v2632_v15  ;;  %2015 = vmatprep.subr.bf16.mxu0 %v2534_v10 }
 0x1de   :  { %2241 = vmatprep.subr.bf16.mxu1 %v2534_v10 }
 0x1e0   :  { %2016 = vmatpush3.bf16.msra.mxu0 %v2701_v47 }
 0x1e1   :  { %2242 = vmatpush3.bf16.msra.mxu1 %v2636_v16  ;;  %2017 = vmatprep.subr.bf16.mxu0 %v2534_v10 }
 0x1e2   :  { %2243 = vmatprep.subr.bf16.mxu1 %v2534_v10 }
 0x1e4   :  { %2018 = vmatpush3.bf16.msra.mxu0 %v2707_v51 }
 0x1e5   :  { %2244 = vmatpush3.bf16.msra.mxu1 %v2641_v17  ;;  %2019 = vmatprep.subr.bf16.mxu0 %v2534_v10 }
 0x1e6   :  { %2245 = vmatprep.subr.bf16.mxu1 %v2534_v10 }
 0x1e8   :  { %2020 = vmatpush3.bf16.msra.mxu0 %v2715_v55 }
 0x1e9   :  { %2246 = vmatpush3.bf16.msra.mxu1 %v2645_v18  ;;  %2021 = vmatprep.subr.bf16.mxu0 %v2534_v10 }
 0x1ea   :  { %2271 = vmatprep.subr.bf16.mxu1 %v2534_v10 }
 0x1ec   :  { %v769_v19 = vpop.f32.mrf.mxu1  ;;  %2022 = vmatpush3.bf16.msra.mxu0 %v2721_v58  ;;  %2248 = vmatmul.mubr.bf16.vlgmr.msra.gmra.mxu1 %v1370_v9 }
 0x1ed   :  { %2272 = vmatpush3.bf16.msra.mxu1 %v2615_v11  ;;  %2023 = vmatprep.subr.bf16.mxu0 %v2534_v10  ;;  %v770_v21 = vadd.f32 %v2817_v53, %v769_v19 }
 0x1ee   :  { %v2009_v20 = vpop.f32.mrf.mxu1  ;;  %2273 = vmatprep.subr.bf16.mxu1 %v2534_v10  ;;  %2287 = vmatprep.mubr.msk.bf16.mxu1 %vm2535_vm1, %v2534_v10 }
 0x1ef   :  { %v776_v26 = vmax.f32 %v770_v21, 0.0 }
 0x1f0   :  { %v772_v22 = vpop.f32.mrf.mxu1  ;;  %2024 = vmatpush3.bf16.msra.mxu0 %v2730_v60 }
 0x1f1   :  { %v773_v23 = vadd.f32 %v2817_v53, %v772_v22  ;;  %2274 = vmatpush3.bf16.msra.mxu1 %v2618_v12  ;;  %2025 = vmatprep.subr.bf16.mxu0 %v2534_v10 }
 0x1f2   :  { %v2010_v24 = vpop.f32.mrf.mxu1  ;;  %2275 = vmatprep.subr.bf16.mxu1 %v2534_v10 }
 0x1f3   :  { %v777_v27 = vmax.f32 %v773_v23, 0.0 }
 0x1f4   :  { %2026 = vmatpush3.bf16.msra.mxu0 %v2736_v61 }
 0x1f5   :  { %v778_v28 = vpack.c.bf16 %v777_v27, %v776_v26  ;;  %2276 = vmatpush3.bf16.msra.mxu1 %v2624_v13  ;;  %2051 = vmatprep.subr.bf16.mxu0 %v2534_v10 }
 0x1f6   :  { %2277 = vmatprep.subr.bf16.mxu1 %v2534_v10 }
 0x1f7   :  { %2028 = vmatmul.mubr.bf16.vlgmr.msra.gmra.mxu0 %v778_v28 }
 0x1f8   :  { %2052 = vmatpush3.bf16.msra.mxu0 %v2689_v42  ;;  %2067 = vmatprep.mubr.msk.bf16.mxu0 %vm2535_vm1, %v2534_v10 }
 0x1f9   :  { %2278 = vmatpush3.bf16.msra.mxu1 %v2628_v14  ;;  %2053 = vmatprep.subr.bf16.mxu0 %v2534_v10 }
 0x1fa   :  { %2279 = vmatprep.subr.bf16.mxu1 %v2534_v10 }
 0x1fc   :  { %2054 = vmatpush3.bf16.msra.mxu0 %v2695_v43 }
 0x1fd   :  { %2280 = vmatpush3.bf16.msra.mxu1 %v2632_v15  ;;  %2055 = vmatprep.subr.bf16.mxu0 %v2534_v10 }
 0x1fe   :  { %2281 = vmatprep.subr.bf16.mxu1 %v2534_v10 }
 0x200   :  { %2056 = vmatpush3.bf16.msra.mxu0 %v2701_v47 }
 0x201   :  { %2282 = vmatpush3.bf16.msra.mxu1 %v2636_v16  ;;  %2057 = vmatprep.subr.bf16.mxu0 %v2534_v10 }
 0x202   :  { %2283 = vmatprep.subr.bf16.mxu1 %v2534_v10 }
 0x204   :  { %2058 = vmatpush3.bf16.msra.mxu0 %v2707_v51 }
 0x205   :  { %2284 = vmatpush3.bf16.msra.mxu1 %v2641_v17  ;;  %2059 = vmatprep.subr.bf16.mxu0 %v2534_v10 }
 0x206   :  { %2285 = vmatprep.subr.bf16.mxu1 %v2534_v10 }
 0x208   :  { %2060 = vmatpush3.bf16.msra.mxu0 %v2715_v55 }
 0x209   :  { %2286 = vmatpush3.bf16.msra.mxu1 %v2645_v18  ;;  %2061 = vmatprep.subr.bf16.mxu0 %v2534_v10 }
 0x20a   :  { %2311 = vmatprep.subr.bf16.mxu1 %v2534_v10 }
 0x20c   :  { %v875_v41 = vpop.f32.mrf.mxu1  ;;  %2062 = vmatpush3.bf16.msra.mxu0 %v2721_v58  ;;  %2288 = vmatmul.mubr.bf16.vlgmr.msra.gmra.mxu1 %v1476_v40  ;;  %v3014_v40 = vld [vmem:[%s3108_s7] ss:$0 sm:$0xff]  ;;  %s2536_s7 = smov [#allocation13]  }
 0x20d   :  { %2312 = vmatpush3.bf16.msra.mxu1 %v2615_v11  ;;  %2063 = vmatprep.subr.bf16.mxu0 %v2534_v10  ;;  %v876_v45 = vadd.f32 %v2817_v53, %v875_v41  ;;  %s1683_s14 = sshll.u32 %s2536_s7, 4  ;;  %s1684_s14 = int_to_ptr.vmem [resolvable:$true] %s1683_s14 }
 0x20e   :  { %v2049_v44 = vpop.f32.mrf.mxu1  ;;  %2313 = vmatprep.subr.bf16.mxu1 %v2534_v10  ;;  %2327 = vmatprep.mubr.msk.bf16.mxu1 %vm2535_vm1, %v2534_v10  ;;  %s2496_s15 = scalar_lea.vmem %s1684_s14, 1280  ;;  %p2501_p12 = scmp.lt.s32.totalorder %s1684_s14, %s1684_s14 }
 0x20f   :  { %v882_v49 = vmax.f32 %v876_v45, 0.0  ;;  %p2497_p11 = scmp.ne.s32.totalorder %s1684_s14, %s2496_s15  ;;  %p2502_p13 = scmp.lt.s32.totalorder %s2496_s15, %s2496_s15 }
 0x210   :  { %v878_v46 = vpop.f32.mrf.mxu1  ;;  %2064 = vmatpush3.bf16.msra.mxu0 %v2730_v60 }
 0x211   :  { %v879_v48 = vadd.f32 %v2817_v53, %v878_v46  ;;  %2314 = vmatpush3.bf16.msra.mxu1 %v2618_v12  ;;  %2065 = vmatprep.subr.bf16.mxu0 %v2534_v10  ;;  %v1576_v12 = vunpack.c.h.bf16 %v2875_v29  ;;  %p2503_p0 = por %p2502_p13, %p2501_p12 }
 0x212   :  { %v2050_v11 = vpop.f32.mrf.mxu1  ;;  %2315 = vmatprep.subr.bf16.mxu1 %v2534_v10 }
 0x213   :  { %v883_v50 = vmax.f32 %v879_v48, 0.0  ;;  %p2504_p1 = pnand %p2503_p0, %p2497_p11 }
 0x214   :  { %2066 = vmatpush3.bf16.msra.mxu0 %v2736_v61 }
 0x215   :  { %v884_v52 = vpack.c.bf16 %v883_v50, %v882_v49  ;;  %2316 = vmatpush3.bf16.msra.mxu1 %v2624_v13  ;;  %2091 = vmatprep.subr.bf16.mxu0 %v2534_v10  ;;  %v1577_v13 = vunpack.c.h.bf16 %v2877_v30 }
 0x216   :  { %2317 = vmatprep.subr.bf16.mxu1 %v2534_v10 }
 0x217   :  { %2068 = vmatmul.mubr.bf16.vlgmr.msra.gmra.mxu0 %v884_v52  ;;  %v1579_v54 = vmul.f32 %v1577_v13, %v2658_v25 }
 0x218   :  { %2092 = vmatpush3.bf16.msra.mxu0 %v2689_v42  ;;  %2107 = vmatprep.mubr.msk.bf16.mxu0 %vm2535_vm1, %v2534_v10 }
 0x219   :  { %2318 = vmatpush3.bf16.msra.mxu1 %v2628_v14  ;;  %2093 = vmatprep.subr.bf16.mxu0 %v2534_v10  ;;  %v1578_v14 = vmul.f32 %v1576_v12, %v2658_v25 }
 0x21a   :  { %2319 = vmatprep.subr.bf16.mxu1 %v2534_v10 }
 0x21b   :  { %v1580_v56 = vadd.f32 %v1578_v14, %v2886_v34 }
 0x21c   :  { %2094 = vmatpush3.bf16.msra.mxu0 %v2695_v43 }
 0x21d   :  { %2320 = vmatpush3.bf16.msra.mxu1 %v2632_v15  ;;  %2095 = vmatprep.subr.bf16.mxu0 %v2534_v10  ;;  %v427_v15 = vpop.f32.mrf.mxu0 }
 0x21e   :  { %2321 = vmatprep.subr.bf16.mxu1 %v2534_v10  ;;  %v1581_v57 = vadd.f32 %v1579_v54, %v427_v15 }
 0x220   :  { %2096 = vmatpush3.bf16.msra.mxu0 %v2701_v47 }
 0x221   :  { %2322 = vmatpush3.bf16.msra.mxu1 %v2636_v16  ;;  %2097 = vmatprep.subr.bf16.mxu0 %v2534_v10  ;;  %v1582_v16 = vpack.c.bf16 %v1581_v57, %v1580_v56 }
 0x222   :  { %2323 = vmatprep.subr.bf16.mxu1 %v2534_v10 }
 0x224   :  { %2098 = vmatpush3.bf16.msra.mxu0 %v2707_v51 }
 0x225   :  { %2324 = vmatpush3.bf16.msra.mxu1 %v2641_v17  ;;  %2099 = vmatprep.subr.bf16.mxu0 %v2534_v10 }
 0x226   :  { %2325 = vmatprep.subr.bf16.mxu1 %v2534_v10 }
 0x228   :  { %2100 = vmatpush3.bf16.msra.mxu0 %v2715_v55 }
 0x229   :  { %2326 = vmatpush3.bf16.msra.mxu1 %v2645_v18  ;;  %2101 = vmatprep.subr.bf16.mxu0 %v2534_v10 }
 0x22c   :  { %v981_v25 = vpop.f32.mrf.mxu1  ;;  %2102 = vmatpush3.bf16.msra.mxu0 %v2721_v58  ;;  %2328 = vmatmul.mubr.bf16.vlgmr.msra.gmra.mxu1 %v1582_v16 }
 0x22d   :  { %2103 = vmatprep.subr.bf16.mxu0 %v2534_v10  ;;  %v982_v59 = vadd.f32 %v2817_v53, %v981_v25 }
 0x22e   :  { %v2089_v17 = vpop.f32.mrf.mxu1 }
 0x22f   :  { %v988_v0 = vmax.f32 %v982_v59, 0.0 }
 0x230   :  { %v984_v62 = vpop.f32.mrf.mxu1  ;;  %2104 = vmatpush3.bf16.msra.mxu0 %v2730_v60 }
 0x231   :  { %v985_v63 = vadd.f32 %v2817_v53, %v984_v62  ;;  %2105 = vmatprep.subr.bf16.mxu0 %v2534_v10 }
 0x232   :  { %v2090_v18 = vpop.f32.mrf.mxu1 }
 0x233   :  { %v989_v1 = vmax.f32 %v985_v63, 0.0 }
 0x234   :  { %2106 = vmatpush3.bf16.msra.mxu0 %v2736_v61 }
 0x235   :  { %v990_v2 = vpack.c.bf16 %v989_v1, %v988_v0  ;;  %2131 = vmatprep.subr.bf16.mxu0 %v2534_v10 }
 0x237   :  { %2108 = vmatmul.mubr.bf16.vlgmr.msra.gmra.mxu0 %v990_v2 }
 0x238   :  { %2132 = vmatpush3.bf16.msra.mxu0 %v2689_v42  ;;  %2147 = vmatprep.mubr.msk.bf16.mxu0 %vm2535_vm1, %v2534_v10 }
 0x239   :  { %2133 = vmatprep.subr.bf16.mxu0 %v2534_v10 }
 0x23c   :  { %2134 = vmatpush3.bf16.msra.mxu0 %v2695_v43 }
 0x23d   :  { %2135 = vmatprep.subr.bf16.mxu0 %v2534_v10 }
 0x240   :  { %2136 = vmatpush3.bf16.msra.mxu0 %v2701_v47 }
 0x241   :  { %2137 = vmatprep.subr.bf16.mxu0 %v2534_v10 }
 0x244   :  { %2138 = vmatpush3.bf16.msra.mxu0 %v2707_v51 }
 0x245   :  { %2139 = vmatprep.subr.bf16.mxu0 %v2534_v10 }
 0x248   :  { %2140 = vmatpush3.bf16.msra.mxu0 %v2715_v55 }
 0x249   :  { %2141 = vmatprep.subr.bf16.mxu0 %v2534_v10 }
 0x24c   :  { %v1087_v3 = vpop.f32.mrf.mxu1  ;;  %2142 = vmatpush3.bf16.msra.mxu0 %v2721_v58 }
 0x24d   :  { %2143 = vmatprep.subr.bf16.mxu0 %v2534_v10  ;;  %v1088_v5 = vadd.f32 %v2817_v53, %v1087_v3 }
 0x24e   :  { %v2129_v4 = vpop.f32.mrf.mxu1 }
 0x24f   :  { %v1094_v9 = vmax.f32 %v1088_v5, 0.0 }
 0x250   :  { %v1090_v6 = vpop.f32.mrf.mxu1  ;;  %2144 = vmatpush3.bf16.msra.mxu0 %v2730_v60 }
 0x251   :  { %v1091_v7 = vadd.f32 %v2817_v53, %v1090_v6  ;;  %2145 = vmatprep.subr.bf16.mxu0 %v2534_v10 }
 0x252   :  { %v2130_v8 = vpop.f32.mrf.mxu1 }
 0x253   :  { %v1095_v19 = vmax.f32 %v1091_v7, 0.0 }
 0x254   :  { %2146 = vmatpush3.bf16.msra.mxu0 %v2736_v61 }
 0x255   :  { %v1096_v20 = vpack.c.bf16 %v1095_v19, %v1094_v9  ;;  %2171 = vmatprep.subr.bf16.mxu0 %v2534_v10 }
 0x257   :  { %2148 = vmatmul.mubr.bf16.vlgmr.msra.gmra.mxu0 %v1096_v20 }
 0x258   :  { %2172 = vmatpush3.bf16.msra.mxu0 %v2689_v42  ;;  %2187 = vmatprep.mubr.msk.bf16.mxu0 %vm2535_vm1, %v2534_v10 }
 0x259   :  { %2173 = vmatprep.subr.bf16.mxu0 %v2534_v10 }
 0x25c   :  { %2174 = vmatpush3.bf16.msra.mxu0 %v2695_v43 }
 0x25d   :  { %2175 = vmatprep.subr.bf16.mxu0 %v2534_v10 }
 0x260   :  { %2176 = vmatpush3.bf16.msra.mxu0 %v2701_v47 }
 0x261   :  { %2177 = vmatprep.subr.bf16.mxu0 %v2534_v10 }
 0x264   :  { %2178 = vmatpush3.bf16.msra.mxu0 %v2707_v51 }
 0x265   :  { %2179 = vmatprep.subr.bf16.mxu0 %v2534_v10 }
 0x268   :  { %2180 = vmatpush3.bf16.msra.mxu0 %v2715_v55 }
 0x269   :  { %2181 = vmatprep.subr.bf16.mxu0 %v2534_v10 }
 0x26c   :  { %v1193_v21 = vpop.f32.mrf.mxu1  ;;  %2182 = vmatpush3.bf16.msra.mxu0 %v2721_v58 }
 0x26d   :  { %2183 = vmatprep.subr.bf16.mxu0 %v2534_v10  ;;  %v1194_v23 = vadd.f32 %v2817_v53, %v1193_v21 }
 0x26e   :  { %v2169_v22 = vpop.f32.mrf.mxu1 }
 0x26f   :  { %v1200_v28 = vmax.f32 %v1194_v23, 0.0 }
 0x270   :  { %v1196_v24 = vpop.f32.mrf.mxu1  ;;  %2184 = vmatpush3.bf16.msra.mxu0 %v2730_v60 }
 0x271   :  { %v1197_v26 = vadd.f32 %v2817_v53, %v1196_v24  ;;  %2185 = vmatprep.subr.bf16.mxu0 %v2534_v10 }
 0x272   :  { %v2170_v27 = vpop.f32.mrf.mxu1 }
 0x273   :  { %v1201_v29 = vmax.f32 %v1197_v26, 0.0 }
 0x274   :  { %2186 = vmatpush3.bf16.msra.mxu0 %v2736_v61 }
 0x275   :  { %v1202_v30 = vpack.c.bf16 %v1201_v29, %v1200_v28  ;;  %2211 = vmatprep.subr.bf16.mxu0 %v2534_v10 }
 0x277   :  { %2188 = vmatmul.mubr.bf16.vlgmr.msra.gmra.mxu0 %v1202_v30 }
 0x278   :  { %2212 = vmatpush3.bf16.msra.mxu0 %v2689_v42  ;;  %2227 = vmatprep.mubr.msk.bf16.mxu0 %vm2535_vm1, %v2534_v10 }
 0x279   :  { %2213 = vmatprep.subr.bf16.mxu0 %v2534_v10 }
 0x27c   :  { %2214 = vmatpush3.bf16.msra.mxu0 %v2695_v43 }
 0x27d   :  { %2215 = vmatprep.subr.bf16.mxu0 %v2534_v10 }
 0x280   :  { %2216 = vmatpush3.bf16.msra.mxu0 %v2701_v47 }
 0x281   :  { %2217 = vmatprep.subr.bf16.mxu0 %v2534_v10 }
 0x284   :  { %2218 = vmatpush3.bf16.msra.mxu0 %v2707_v51 }
 0x285   :  { %2219 = vmatprep.subr.bf16.mxu0 %v2534_v10 }
 0x288   :  { %2220 = vmatpush3.bf16.msra.mxu0 %v2715_v55 }
 0x289   :  { %2221 = vmatprep.subr.bf16.mxu0 %v2534_v10 }
 0x28c   :  { %v1299_v31 = vpop.f32.mrf.mxu1  ;;  %2222 = vmatpush3.bf16.msra.mxu0 %v2721_v58 }
 0x28d   :  { %2223 = vmatprep.subr.bf16.mxu0 %v2534_v10  ;;  %v1300_v33 = vadd.f32 %v2817_v53, %v1299_v31 }
 0x28e   :  { %v2209_v32 = vpop.f32.mrf.mxu1 }
 0x28f   :  { %v1306_v37 = vmax.f32 %v1300_v33, 0.0 }
 0x290   :  { %v1302_v34 = vpop.f32.mrf.mxu1  ;;  %2224 = vmatpush3.bf16.msra.mxu0 %v2730_v60 }
 0x291   :  { %v1303_v35 = vadd.f32 %v2817_v53, %v1302_v34  ;;  %2225 = vmatprep.subr.bf16.mxu0 %v2534_v10 }
 0x292   :  { %v2210_v36 = vpop.f32.mrf.mxu1 }
 0x293   :  { %v1307_v38 = vmax.f32 %v1303_v35, 0.0 }
 0x294   :  { %2226 = vmatpush3.bf16.msra.mxu0 %v2736_v61 }
 0x295   :  { %v1308_v39 = vpack.c.bf16 %v1307_v38, %v1306_v37  ;;  %2251 = vmatprep.subr.bf16.mxu0 %v2534_v10 }
 0x297   :  { %2228 = vmatmul.mubr.bf16.vlgmr.msra.gmra.mxu0 %v1308_v39  ;;  %v707_v41 = vpop.f32.mrf.mxu0 }
 0x298   :  { %v708_v44 = vadd.f32 %v3014_v40, %v707_v41  ;;  %2252 = vmatpush3.bf16.msra.mxu0 %v2689_v42  ;;  %2267 = vmatprep.mubr.msk.bf16.mxu0 %vm2535_vm1, %v2534_v10 }
 0x299   :  { %v1989_v45 = vpop.f32.mrf.mxu0  ;;  %2253 = vmatprep.subr.bf16.mxu0 %v2534_v10 }
 0x29a   :  { %v1751_v46 = vpack.c.bf16 %v708_v44, %v708_v44 }
 0x29b   :  { %v710_v48 = vpop.f32.mrf.mxu0 }
 0x29c   :  { %722 = vst [vmem:[#allocation13] sm:$0xf] %v1751_v46  ;;  %v711_v11 = vadd.f32 %v3014_v40, %v710_v48  ;;  %2254 = vmatpush3.bf16.msra.mxu0 %v2695_v43 }
 0x29d   :  { %v1990_v49 = vpop.f32.mrf.mxu0  ;;  %2255 = vmatprep.subr.bf16.mxu0 %v2534_v10 }
 0x29e   :  { %v1752_v50 = vpack.c.bf16 %v711_v11, %v711_v11 }
 0x2a0   :  { %723 = vst [vmem:[#allocation13 + $0x28] sm:$0xf] %v1752_v50  ;;  %2256 = vmatpush3.bf16.msra.mxu0 %v2701_v47 }
 0x2a1   :  { %2257 = vmatprep.subr.bf16.mxu0 %v2534_v10 }
 0x2a4   :  { %2258 = vmatpush3.bf16.msra.mxu0 %v2707_v51 }
 0x2a5   :  { %2259 = vmatprep.subr.bf16.mxu0 %v2534_v10 }
 0x2a8   :  { %2260 = vmatpush3.bf16.msra.mxu0 %v2715_v55 }
 0x2a9   :  { %2261 = vmatprep.subr.bf16.mxu0 %v2534_v10 }
 0x2ac   :  { %v1405_v52 = vpop.f32.mrf.mxu1  ;;  %2262 = vmatpush3.bf16.msra.mxu0 %v2721_v58 }
 0x2ad   :  { %2263 = vmatprep.subr.bf16.mxu0 %v2534_v10  ;;  %v1406_v13 = vadd.f32 %v2817_v53, %v1405_v52 }
 0x2ae   :  { %v2249_v12 = vpop.f32.mrf.mxu1 }
 0x2af   :  { %v1412_v56 = vmax.f32 %v1406_v13, 0.0 }
 0x2b0   :  { %v1408_v14 = vpop.f32.mrf.mxu1  ;;  %2264 = vmatpush3.bf16.msra.mxu0 %v2730_v60 }
 0x2b1   :  { %v1409_v54 = vadd.f32 %v2817_v53, %v1408_v14  ;;  %2265 = vmatprep.subr.bf16.mxu0 %v2534_v10 }
 0x2b2   :  { %v2250_v15 = vpop.f32.mrf.mxu1 }
 0x2b3   :  { %v1413_v57 = vmax.f32 %v1409_v54, 0.0 }
 0x2b4   :  { %2266 = vmatpush3.bf16.msra.mxu0 %v2736_v61 }
 0x2b5   :  { %v1414_v16 = vpack.c.bf16 %v1413_v57, %v1412_v56  ;;  %2291 = vmatprep.subr.bf16.mxu0 %v2534_v10 }
 0x2b7   :  { %v813_v25 = vpop.f32.mrf.mxu0  ;;  %2268 = vmatmul.mubr.bf16.vlgmr.msra.gmra.mxu0 %v1414_v16 }
 0x2b8   :  { %v814_v17 = vadd.f32 %v3014_v40, %v813_v25  ;;  %2292 = vmatpush3.bf16.msra.mxu0 %v2689_v42  ;;  %2307 = vmatprep.mubr.msk.bf16.mxu0 %vm2535_vm1, %v2534_v10 }
 0x2b9   :  { %v2029_v59 = vpop.f32.mrf.mxu0  ;;  %2293 = vmatprep.subr.bf16.mxu0 %v2534_v10 }
 0x2ba   :  { %v1753_v62 = vpack.c.bf16 %v814_v17, %v814_v17 }
 0x2bb   :  { %v816_v63 = vpop.f32.mrf.mxu0 }
 0x2bc   :  { %828 = vst [vmem:[#allocation13 + $0x4] sm:$0xf] %v1753_v62  ;;  %v817_v18 = vadd.f32 %v3014_v40, %v816_v63  ;;  %2294 = vmatpush3.bf16.msra.mxu0 %v2695_v43 }
 0x2bd   :  { %v2030_v0 = vpop.f32.mrf.mxu0  ;;  %2295 = vmatprep.subr.bf16.mxu0 %v2534_v10 }
 0x2be   :  { %v1754_v1 = vpack.c.bf16 %v817_v18, %v817_v18 }
 0x2c0   :  { %829 = vst [vmem:[#allocation13 + $0x2c] sm:$0xf] %v1754_v1  ;;  %2296 = vmatpush3.bf16.msra.mxu0 %v2701_v47 }
 0x2c1   :  { %2297 = vmatprep.subr.bf16.mxu0 %v2534_v10 }
 0x2c4   :  { %2298 = vmatpush3.bf16.msra.mxu0 %v2707_v51 }
 0x2c5   :  { %2299 = vmatprep.subr.bf16.mxu0 %v2534_v10 }
 0x2c8   :  { %2300 = vmatpush3.bf16.msra.mxu0 %v2715_v55 }
 0x2c9   :  { %2301 = vmatprep.subr.bf16.mxu0 %v2534_v10 }
 0x2cc   :  { %v1511_v2 = vpop.f32.mrf.mxu1  ;;  %2302 = vmatpush3.bf16.msra.mxu0 %v2721_v58 }
 0x2cd   :  { %2303 = vmatprep.subr.bf16.mxu0 %v2534_v10  ;;  %v1512_v4 = vadd.f32 %v2817_v53, %v1511_v2 }
 0x2ce   :  { %v2289_v3 = vpop.f32.mrf.mxu1 }
 0x2cf   :  { %v1518_v8 = vmax.f32 %v1512_v4, 0.0 }
 0x2d0   :  { %v1514_v5 = vpop.f32.mrf.mxu1  ;;  %2304 = vmatpush3.bf16.msra.mxu0 %v2730_v60 }
 0x2d1   :  { %v1515_v6 = vadd.f32 %v2817_v53, %v1514_v5  ;;  %2305 = vmatprep.subr.bf16.mxu0 %v2534_v10 }
 0x2d2   :  { %v2290_v7 = vpop.f32.mrf.mxu1 }
 0x2d3   :  { %v1519_v9 = vmax.f32 %v1515_v6, 0.0 }
 0x2d4   :  { %2306 = vmatpush3.bf16.msra.mxu0 %v2736_v61 }
 0x2d5   :  { %v1520_v19 = vpack.c.bf16 %v1519_v9, %v1518_v8  ;;  %2331 = vmatprep.subr.bf16.mxu0 %v2534_v10 }
 0x2d7   :  { %v919_v20 = vpop.f32.mrf.mxu0  ;;  %2308 = vmatmul.mubr.bf16.vlgmr.msra.gmra.mxu0 %v1520_v19 }
 0x2d8   :  { %v920_v21 = vadd.f32 %v3014_v40, %v919_v20  ;;  %2332 = vmatpush3.bf16.msra.mxu0 %v2689_v42  ;;  %2347 = vmatprep.mubr.msk.bf16.mxu0 %vm2535_vm1, %v2534_v10 }
 0x2d9   :  { %v2069_v22 = vpop.f32.mrf.mxu0  ;;  %2333 = vmatprep.subr.bf16.mxu0 %v2534_v10 }
 0x2da   :  { %v1755_v23 = vpack.c.bf16 %v920_v21, %v920_v21 }
 0x2db   :  { %v922_v24 = vpop.f32.mrf.mxu0 }
 0x2dc   :  { %934 = vst [vmem:[#allocation13 + $0x8] sm:$0xf] %v1755_v23  ;;  %v923_v26 = vadd.f32 %v3014_v40, %v922_v24  ;;  %2334 = vmatpush3.bf16.msra.mxu0 %v2695_v43 }
 0x2dd   :  { %v2070_v27 = vpop.f32.mrf.mxu0  ;;  %2335 = vmatprep.subr.bf16.mxu0 %v2534_v10 }
 0x2de   :  { %v1756_v28 = vpack.c.bf16 %v923_v26, %v923_v26 }
 0x2e0   :  { %935 = vst [vmem:[#allocation13 + $0x30] sm:$0xf] %v1756_v28  ;;  %2336 = vmatpush3.bf16.msra.mxu0 %v2701_v47 }
 0x2e1   :  { %2337 = vmatprep.subr.bf16.mxu0 %v2534_v10 }
 0x2e4   :  { %2338 = vmatpush3.bf16.msra.mxu0 %v2707_v51 }
 0x2e5   :  { %2339 = vmatprep.subr.bf16.mxu0 %v2534_v10 }
 0x2e8   :  { %2340 = vmatpush3.bf16.msra.mxu0 %v2715_v55 }
 0x2e9   :  { %2341 = vmatprep.subr.bf16.mxu0 %v2534_v10 }
 0x2ec   :  { %v1617_v42 = vpop.f32.mrf.mxu1  ;;  %2342 = vmatpush3.bf16.msra.mxu0 %v2721_v58 }
 0x2ed   :  { %2343 = vmatprep.subr.bf16.mxu0 %v2534_v10  ;;  %v1618_v29 = vadd.f32 %v2817_v53, %v1617_v42 }
 0x2ee   :  { %v2329_v43 = vpop.f32.mrf.mxu1 }
 0x2ef   :  { %v1624_v31 = vmax.f32 %v1618_v29, 0.0 }
 0x2f0   :  { %v1620_v30 = vpop.f32.mrf.mxu1  ;;  %2344 = vmatpush3.bf16.msra.mxu0 %v2730_v60 }
 0x2f1   :  { %v1621_v47 = vadd.f32 %v2817_v53, %v1620_v30  ;;  %2345 = vmatprep.subr.bf16.mxu0 %v2534_v10 }
 0x2f2   :  { %v2330_v51 = vpop.f32.mrf.mxu1 }
 0x2f3   :  { %v1625_v55 = vmax.f32 %v1621_v47, 0.0 }
 0x2f4   :  { %2346 = vmatpush3.bf16.msra.mxu0 %v2736_v61 }
 0x2f5   :  { %v1626_v32 = vpack.c.bf16 %v1625_v55, %v1624_v31 }
 0x2f7   :  { %v1025_v33 = vpop.f32.mrf.mxu0  ;;  %2348 = vmatmul.mubr.bf16.vlgmr.msra.gmra.mxu0 %v1626_v32 }
 0x2f8   :  { %v1026_v58 = vadd.f32 %v3014_v40, %v1025_v33 }
 0x2f9   :  { %v2109_v34 = vpop.f32.mrf.mxu0 }
 0x2fa   :  { %v1757_v35 = vpack.c.bf16 %v1026_v58, %v1026_v58 }
 0x2fb   :  { %v1028_v36 = vpop.f32.mrf.mxu0 }
 0x2fc   :  { %1040 = vst [vmem:[#allocation13 + $0xc] sm:$0xf] %v1757_v35  ;;  %v1029_v60 = vadd.f32 %v3014_v40, %v1028_v36 }
 0x2fd   :  { %v2110_v37 = vpop.f32.mrf.mxu0 }
 0x2fe   :  { %v1758_v53 = vpack.c.bf16 %v1029_v60, %v1029_v60 }
 0x300   :  { %1041 = vst [vmem:[#allocation13 + $0x34] sm:$0xf] %v1758_v53 }
 0x317   :  { %v1131_v10 = vpop.f32.mrf.mxu0 }
 0x318   :  { %v1132_v38 = vadd.f32 %v3014_v40, %v1131_v10 }
 0x319   :  { %v2149_v39 = vpop.f32.mrf.mxu0 }
 0x31a   :  { %v1759_v41 = vpack.c.bf16 %v1132_v38, %v1132_v38 }
 0x31b   :  { %v1134_v61 = vpop.f32.mrf.mxu0 }
 0x31c   :  { %1146 = vst [vmem:[#allocation13 + $0x10] sm:$0xf] %v1759_v41  ;;  %v1135_v44 = vadd.f32 %v3014_v40, %v1134_v61 }
 0x31d   :  { %v2150_v45 = vpop.f32.mrf.mxu0 }
 0x31e   :  { %v1760_v46 = vpack.c.bf16 %v1135_v44, %v1135_v44 }
 0x320   :  { %1147 = vst [vmem:[#allocation13 + $0x38] sm:$0xf] %v1760_v46 }
 0x337   :  { %v1237_v48 = vpop.f32.mrf.mxu0 }
 0x338   :  { %v1238_v11 = vadd.f32 %v3014_v40, %v1237_v48 }
 0x339   :  { %v2189_v49 = vpop.f32.mrf.mxu0 }
 0x33a   :  { %v1761_v50 = vpack.c.bf16 %v1238_v11, %v1238_v11 }
 0x33b   :  { %v1240_v52 = vpop.f32.mrf.mxu0 }
 0x33c   :  { %1252 = vst [vmem:[#allocation13 + $0x14] sm:$0xf] %v1761_v50  ;;  %v1241_v12 = vadd.f32 %v3014_v40, %v1240_v52 }
 0x33d   :  { %v2190_v13 = vpop.f32.mrf.mxu0 }
 0x33e   :  { %v1762_v14 = vpack.c.bf16 %v1241_v12, %v1241_v12 }
 0x340   :  { %1253 = vst [vmem:[#allocation13 + $0x3c] sm:$0xf] %v1762_v14 }
 0x357   :  { %v1343_v54 = vpop.f32.mrf.mxu0 }
 0x358   :  { %v1344_v15 = vadd.f32 %v3014_v40, %v1343_v54 }
 0x359   :  { %v2229_v56 = vpop.f32.mrf.mxu0 }
 0x35a   :  { %v1763_v57 = vpack.c.bf16 %v1344_v15, %v1344_v15 }
 0x35b   :  { %v1346_v16 = vpop.f32.mrf.mxu0 }
 0x35c   :  { %1358 = vst [vmem:[#allocation13 + $0x18] sm:$0xf] %v1763_v57  ;;  %v1347_v25 = vadd.f32 %v3014_v40, %v1346_v16 }
 0x35d   :  { %v2230_v17 = vpop.f32.mrf.mxu0 }
 0x35e   :  { %v1764_v59 = vpack.c.bf16 %v1347_v25, %v1347_v25 }
 0x360   :  { %1359 = vst [vmem:[#allocation13 + $0x40] sm:$0xf] %v1764_v59 }
 0x377   :  { %v1449_v62 = vpop.f32.mrf.mxu0 }
 0x378   :  { %v1450_v63 = vadd.f32 %v3014_v40, %v1449_v62 }
 0x379   :  { %v2269_v18 = vpop.f32.mrf.mxu0 }
 0x37a   :  { %v1765_v0 = vpack.c.bf16 %v1450_v63, %v1450_v63 }
 0x37b   :  { %v1452_v1 = vpop.f32.mrf.mxu0 }
 0x37c   :  { %1464 = vst [vmem:[#allocation13 + $0x1c] sm:$0xf] %v1765_v0  ;;  %v1453_v2 = vadd.f32 %v3014_v40, %v1452_v1 }
 0x37d   :  { %v2270_v3 = vpop.f32.mrf.mxu0 }
 0x37e   :  { %v1766_v4 = vpack.c.bf16 %v1453_v2, %v1453_v2 }
 0x380   :  { %1465 = vst [vmem:[#allocation13 + $0x44] sm:$0xf] %v1766_v4 }
 0x397   :  { %v1555_v5 = vpop.f32.mrf.mxu0 }
 0x398   :  { %v1556_v6 = vadd.f32 %v3014_v40, %v1555_v5 }
 0x399   :  { %v2309_v7 = vpop.f32.mrf.mxu0 }
 0x39a   :  { %v1767_v8 = vpack.c.bf16 %v1556_v6, %v1556_v6 }
 0x39b   :  { %v1558_v9 = vpop.f32.mrf.mxu0 }
 0x39c   :  { %1570 = vst [vmem:[#allocation13 + $0x20] sm:$0xf] %v1767_v8  ;;  %v1559_v19 = vadd.f32 %v3014_v40, %v1558_v9 }
 0x39d   :  { %v2310_v20 = vpop.f32.mrf.mxu0 }
 0x39e   :  { %v1768_v21 = vpack.c.bf16 %v1559_v19, %v1559_v19 }
 0x3a0   :  { %1571 = vst [vmem:[#allocation13 + $0x48] sm:$0xf] %v1768_v21 }
 0x3b7   :  { %v1661_v22 = vpop.f32.mrf.mxu0 }
 0x3b8   :  { %v1662_v23 = vadd.f32 %v3014_v40, %v1661_v22 }
 0x3b9   :  { %v2349_v24 = vpop.f32.mrf.mxu0 }
 0x3ba   :  { %v1769_v26 = vpack.c.bf16 %v1662_v23, %v1662_v23 }
 0x3bb   :  { %v1664_v27 = vpop.f32.mrf.mxu0 }
 0x3bc   :  { %1676 = vst [vmem:[#allocation13 + $0x24] sm:$0xf] %v1769_v26  ;;  %v1665_v28 = vadd.f32 %v3014_v40, %v1664_v27 }
 0x3bd   :  { %v2350_v42 = vpop.f32.mrf.mxu0 }
 0x3be   :  { %v1770_v43 = vpack.c.bf16 %v1665_v28, %v1665_v28 }
 0x3c0   :  { %1677 = vst [vmem:[#allocation13 + $0x4c] sm:$0xf] %v1770_v43 }
 0x3c1   :  { %2507 = shalt.err (!%p2504_p1)
}
 0x3c2   :  { %1689 = dma.vmem_to_hbm [thread:$0]  %s1684_s14, 1280, %s3109_s8, [#allocation6], %s2525_s30, %s2525_s30, %s2526_s9  }
 0x3c3   :  { %2522 = dma.done.wait [#allocation6], 1280  }
 0x3c4   :  { %2523 = vsyncadd [#allocation6], 4294966016 }
 0x3c5   :  { %1693 = vsyncpa [#allocation5], 1 }
 0x3c6   :  { %1694 = vsyncpa [#allocation8], 1 }
 0x3c7   :  { %1695 = vsyncpa [#allocation11], 1 }
 0x3c8   :  { %1696 = vsyncpa [#allocation6], 1 }

</bundles_post_ra>
